<compile_context>
chip_gen: v7x
topology: tpu7x:2x2x1
jax: 0.10.0
libtpu: 0.0.40
codegen_flags: <defaults>
</compile_context>

<pallas_src>
import math
from functools import partial

import jax
import jax.numpy as jnp
from jax import lax
from jax.experimental import pallas as pl
from jax.experimental.pallas import tpu as pltpu

# ---------------- small, DistilBERT-shaped config ----------------
VOCAB      = 100
MAX_POS    = 16
HIDDEN     = 32          # stands in for 768
N_HEADS    = 4           # stands in for 12
HEAD_DIM   = HIDDEN // N_HEADS
FFN        = 64          # stands in for 3072
N_LAYERS   = 2           # stands in for 6
EMBED_OUT  = 16          # args['text_embedding_size']
LN_EPS     = 1e-12       # DistilBERT LayerNorm eps
NEG_INF    = -1e9
WDT        = jnp.bfloat16   # MXU operand dtype (weights + activations at matmuls)


# ---------------- in-kernel helpers (f32 math) ----------------
def _ln(x, g, b):
    mu = jnp.mean(x, axis=-1, keepdims=True)
    var = jnp.mean((x - mu) ** 2, axis=-1, keepdims=True)
    return (x - mu) * lax.rsqrt(var + LN_EPS) * g + b


def _gelu(x):
    # exact (erf) GELU, matching torch.nn.functional.gelu default
    return 0.5 * x * (1.0 + lax.erf(x * (1.0 / math.sqrt(2.0))))


# ---------------- fused encoder kernel (grid = layers) ----------------
def _encoder_kernel(B, S,
                    x_ref, bias_ref,
                    emb_g_ref, emb_b_ref,
                    qkv_w_ref, qkv_b_ref, o_w_ref, o_b_ref,
                    ln1_g_ref, ln1_b_ref,
                    ff1_w_ref, ff1_b_ref, ff2_w_ref, ff2_b_ref,
                    ln2_g_ref, ln2_b_ref,
                    fc_w_ref, fc_b_ref,
                    out_ref,
                    h_vmem, ctx_vmem):
    l = pl.program_id(0)
    H = HIDDEN

    # --- layer 0: embedding LayerNorm (word+pos added in XLA), init resident act ---
    @pl.when(l == 0)
    def _():
        x0 = x_ref[...].astype(jnp.float32)                     # (B*S, H)
        h_vmem[...] = _ln(x0, emb_g_ref[...], emb_b_ref[...])

    x = h_vmem[...]                                             # (B*S, H) f32, resident

    # --- fused QKV projection for the whole batch: bf16 operands, f32 accumulate ---
    qkv = jnp.dot(x.astype(WDT), qkv_w_ref[0],
                  preferred_element_type=jnp.float32) + qkv_b_ref[0]   # (B*S, 3H)

    # --- attention: per (batch, head) online math, ctx written into lane slots ---
    for b in range(B):
        r = b * S
        qkv_rows = qkv[r:r + S, :]                              # (S, 3H)
        bias_row = bias_ref[b:b + 1, :]                         # (1, S) additive mask
        for hd in range(N_HEADS):
            lo = hd * HEAD_DIM
            q = qkv_rows[:, lo:lo + HEAD_DIM]                   # 1/sqrt(D) folded in q_w
            k = qkv_rows[:, H + lo:H + lo + HEAD_DIM]
            v = qkv_rows[:, 2 * H + lo:2 * H + lo + HEAD_DIM]

            s = lax.dot_general(q, k, (((1,), (1,)), ((), ())),
                                preferred_element_type=jnp.float32)     # (S, S)
            s = s + bias_row
            s = s - jnp.max(s, axis=-1, keepdims=True)
            p = jnp.exp(s)
            p = p * pl.reciprocal(jnp.sum(p, axis=-1, keepdims=True), approx=True)
            ctx_vmem[r:r + S, lo:lo + HEAD_DIM] = jnp.dot(
                p, v, preferred_element_type=jnp.float32)       # head lane slot

    # --- ONE output projection over all heads / all batch rows ---
    sa = jnp.dot(ctx_vmem[...].astype(WDT), o_w_ref[0],
                 preferred_element_type=jnp.float32) + o_b_ref[0]

    # --- residual + LayerNorm 1 (fused) ---
    sa = _ln(sa + x, ln1_g_ref[0], ln1_b_ref[0])

    # --- FFN: GELU(sa @ w1 + b1) @ w2 + b2 ---
    ff = jnp.dot(sa.astype(WDT), ff1_w_ref[0],
                 preferred_element_type=jnp.float32) + ff1_b_ref[0]
    ff = _gelu(ff)
    ff = jnp.dot(ff.astype(WDT), ff2_w_ref[0],
                 preferred_element_type=jnp.float32) + ff2_b_ref[0]

    # --- residual + LayerNorm 2 (fused), keep activations resident ---
    h_new = _ln(ff + sa, ln2_g_ref[0], ln2_b_ref[0])
    h_vmem[...] = h_new

    # --- last layer: CLS pooling + Linear projection fused in ---
    @pl.when(l == pl.num_programs(0) - 1)
    def _():
        cls = jnp.concatenate([h_new[b * S:b * S + 1, :] for b in range(B)],
                              axis=0)                           # (B, H)
        out = jnp.dot(cls.astype(WDT), fc_w_ref[...],
                      preferred_element_type=jnp.float32) + fc_b_ref[...]
        out_ref[...] = out.astype(out_ref.dtype)


# ---------------- pallas_call wrapper ----------------
def encoder_forward(p, h0, bias, B, S):
    H = HIDDEN

    def inv(shape):                      # layer-invariant tensors (constant index map)
        n = len(shape)
        return pl.BlockSpec(shape, lambda l: (0,) * n)

    def per_layer(shape):                # per-layer stacked weights, streamed over grid
        n = len(shape)
        return pl.BlockSpec((1,) + shape, lambda l: (l,) + (0,) * n)

    return pl.pallas_call(
        partial(_encoder_kernel, B, S),
        out_shape=jax.ShapeDtypeStruct((B, EMBED_OUT), jnp.float32),
        grid=(N_LAYERS,),
        in_specs=[
            inv((B * S, H)),                                # embedded input (pre-LN)
            inv((B, S)),                                    # additive attention bias
            inv((1, H)), inv((1, H)),                       # embedding LN gamma / beta
            per_layer((H, 3 * H)), per_layer((1, 3 * H)),   # fused QKV weight / bias
            per_layer((H, H)),     per_layer((1, H)),       # output projection
            per_layer((1, H)),     per_layer((1, H)),       # LN1 gamma / beta
            per_layer((H, FFN)),   per_layer((1, FFN)),     # FFN up
            per_layer((FFN, H)),   per_layer((1, H)),       # FFN down
            per_layer((1, H)),     per_layer((1, H)),       # LN2 gamma / beta
            inv((H, EMBED_OUT)),   inv((1, EMBED_OUT)),     # final Linear (fc)
        ],
        out_specs=pl.BlockSpec((B, EMBED_OUT), lambda l: (0, 0)),
        scratch_shapes=[
            pltpu.VMEM((B * S, H), jnp.float32),   # resident activations across layers
            pltpu.VMEM((B * S, H), jnp.float32),   # per-layer attention context (lane slots)
        ],
        compiler_params=pltpu.CompilerParams(
            dimension_semantics=("arbitrary",)),   # layer axis carries VMEM state
    )(h0, bias,
      p["emb_ln_g"], p["emb_ln_b"],
      p["qkv_w"], p["qkv_b"], p["o_w"], p["o_b"],
      p["ln1_g"], p["ln1_b"],
      p["ff1_w"], p["ff1_b"], p["ff2_w"], p["ff2_b"],
      p["ln2_g"], p["ln2_b"],
      p["fc_w"], p["fc_b"])


# ---------------- model (glue in plain JAX, hot path in one Pallas call) ----------------
def distilbert_forward(params, input_ids, attention_mask):
    B, S = input_ids.shape
    # Embeddings: word + position (LayerNorm is fused into the kernel at l==0)
    word = jnp.take(params["word_emb"], input_ids, axis=0)       # (B, S, H)
    pos = params["pos_emb"][:S]                                  # (S, H)
    h0 = (word + pos[None, :, :]).reshape(B * S, HIDDEN)

    # additive attention bias from padding mask: 0 where valid, -1e9 where pad
    bias = jnp.where(attention_mask > 0, 0.0, NEG_INF).astype(jnp.float32)   # (B, S)

    return encoder_forward(params, h0, bias, B, S)               # (B, EMBED_OUT)


# ---------------- deterministic parameter init (layer-stacked) ----------------
def init_params(key):
    keys = iter(jax.random.split(key, 8 + N_LAYERS * 8))

    def nrm(shape, scale=0.02):
        return scale * jax.random.normal(next(keys), shape, dtype=jnp.float32)

    params = {
        "word_emb": nrm((VOCAB, HIDDEN)),
        "pos_emb": nrm((MAX_POS, HIDDEN)),
        "emb_ln_g": jnp.ones((1, HIDDEN), jnp.float32),
        "emb_ln_b": jnp.zeros((1, HIDDEN), jnp.float32),
        "fc_w": nrm((HIDDEN, EMBED_OUT)).astype(WDT),
        "fc_b": jnp.zeros((1, EMBED_OUT), jnp.float32),
    }

    scale = 1.0 / math.sqrt(HEAD_DIM)
    qkv_w, o_w, ff1_w, ff2_w = [], [], [], []
    for _ in range(N_LAYERS):
        # fold 1/sqrt(head_dim) attention scale into the Q projection (init-time, free)
        q_w = nrm((HIDDEN, HIDDEN)) * scale
        k_w = nrm((HIDDEN, HIDDEN))
        v_w = nrm((HIDDEN, HIDDEN))
        qkv_w.append(jnp.concatenate([q_w, k_w, v_w], axis=1))   # (H, 3H)
        o_w.append(nrm((HIDDEN, HIDDEN)))
        ff1_w.append(nrm((HIDDEN, FFN)))
        ff2_w.append(nrm((FFN, HIDDEN)))

    L = N_LAYERS
    params.update({
        "qkv_w": jnp.stack(qkv_w).astype(WDT),                   # (L, H, 3H)
        "qkv_b": jnp.zeros((L, 1, 3 * HIDDEN), jnp.float32),
        "o_w":   jnp.stack(o_w).astype(WDT),                     # (L, H, H)
        "o_b":   jnp.zeros((L, 1, HIDDEN), jnp.float32),
        "ln1_g": jnp.ones((L, 1, HIDDEN), jnp.float32),
        "ln1_b": jnp.zeros((L, 1, HIDDEN), jnp.float32),
        "ff1_w": jnp.stack(ff1_w).astype(WDT),                   # (L, H, FFN)
        "ff1_b": jnp.zeros((L, 1, FFN), jnp.float32),
        "ff2_w": jnp.stack(ff2_w).astype(WDT),                   # (L, FFN, H)
        "ff2_b": jnp.zeros((L, 1, HIDDEN), jnp.float32),
        "ln2_g": jnp.ones((L, 1, HIDDEN), jnp.float32),
        "ln2_b": jnp.zeros((L, 1, HIDDEN), jnp.float32),
    })
    return params


if __name__ == "__main__":
    key = jax.random.PRNGKey(0)
    pkey, ikey = jax.random.split(key)

    params = init_params(pkey)

    B, S = 2, 8
    input_ids = jax.random.randint(ikey, (B, S), 0, VOCAB, dtype=jnp.int32)
    attention_mask = jnp.ones((B, S), dtype=jnp.int32)   # no padding in demo batch

    out = jax.jit(distilbert_forward)(params, input_ids, attention_mask)
    out = jax.block_until_ready(out)

    assert out.shape == (B, EMBED_OUT), out.shape
    assert jnp.all(jnp.isfinite(out))
    print("KERNEL_OK")
</pallas_src>

<mosaic_0001>
module attributes {stable_mosaic.version = 11 : i64} {
  func.func @_encoder_kernel(%arg0: i32, %arg1: memref<16x32xf32, #tpu.memory_space<vmem>>, %arg2: memref<2x8xf32, #tpu.memory_space<vmem>>, %arg3: memref<1x32xf32, #tpu.memory_space<vmem>>, %arg4: memref<1x32xf32, #tpu.memory_space<vmem>>, %arg5: memref<1x32x96xbf16, #tpu.memory_space<vmem>>, %arg6: memref<1x1x96xf32, #tpu.memory_space<vmem>>, %arg7: memref<1x32x32xbf16, #tpu.memory_space<vmem>>, %arg8: memref<1x1x32xf32, #tpu.memory_space<vmem>>, %arg9: memref<1x1x32xf32, #tpu.memory_space<vmem>>, %arg10: memref<1x1x32xf32, #tpu.memory_space<vmem>>, %arg11: memref<1x32x64xbf16, #tpu.memory_space<vmem>>, %arg12: memref<1x1x64xf32, #tpu.memory_space<vmem>>, %arg13: memref<1x64x32xbf16, #tpu.memory_space<vmem>>, %arg14: memref<1x1x32xf32, #tpu.memory_space<vmem>>, %arg15: memref<1x1x32xf32, #tpu.memory_space<vmem>>, %arg16: memref<1x1x32xf32, #tpu.memory_space<vmem>>, %arg17: memref<32x16xbf16, #tpu.memory_space<vmem>>, %arg18: memref<1x16xf32, #tpu.memory_space<vmem>>, %arg19: memref<2x16xf32, #tpu.memory_space<vmem>>, %arg20: memref<16x32xf32, #tpu.memory_space<vmem>>, %arg21: memref<16x32xf32, #tpu.memory_space<vmem>>) attributes {dimension_semantics = [#tpu.dimension_semantics<arbitrary>], iteration_bounds = array<i64: 2>, scalar_prefetch = 0 : i64, scratch_operands = 2 : i64, tpu.core_type = #tpu.core_type<tc>, window_params = [{pipeline_mode = #tpu.pipeline_mode<synchronous>, transform_indices = @transform_0, window_bounds = array<i64: 16, 32>}, {pipeline_mode = #tpu.pipeline_mode<synchronous>, transform_indices = @transform_1, window_bounds = array<i64: 2, 8>}, {pipeline_mode = #tpu.pipeline_mode<synchronous>, transform_indices = @transform_2, window_bounds = array<i64: 1, 32>}, {pipeline_mode = #tpu.pipeline_mode<synchronous>, transform_indices = @transform_3, window_bounds = array<i64: 1, 32>}, {transform_indices = @transform_4, window_bounds = array<i64: 1, 32, 96>}, {transform_indices = @transform_5, window_bounds = array<i64: 1, 1, 96>}, {transform_indices = @transform_6, window_bounds = array<i64: 1, 32, 32>}, {transform_indices = @transform_7, window_bounds = array<i64: 1, 1, 32>}, {transform_indices = @transform_8, window_bounds = array<i64: 1, 1, 32>}, {transform_indices = @transform_9, window_bounds = array<i64: 1, 1, 32>}, {transform_indices = @transform_10, window_bounds = array<i64: 1, 32, 64>}, {transform_indices = @transform_11, window_bounds = array<i64: 1, 1, 64>}, {transform_indices = @transform_12, window_bounds = array<i64: 1, 64, 32>}, {transform_indices = @transform_13, window_bounds = array<i64: 1, 1, 32>}, {transform_indices = @transform_14, window_bounds = array<i64: 1, 1, 32>}, {transform_indices = @transform_15, window_bounds = array<i64: 1, 1, 32>}, {pipeline_mode = #tpu.pipeline_mode<synchronous>, transform_indices = @transform_16, window_bounds = array<i64: 32, 16>}, {pipeline_mode = #tpu.pipeline_mode<synchronous>, transform_indices = @transform_17, window_bounds = array<i64: 1, 16>}, {pipeline_mode = #tpu.pipeline_mode<synchronous>, transform_indices = @transform_18, window_bounds = array<i64: 2, 16>}]} {
    %c0_i32 = arith.constant 0 : i32
    %0 = arith.cmpi eq, %arg0, %c0_i32 : i32
    %1 = arith.extui %0 : i1 to i32
    %c0_i32_0 = arith.constant 0 : i32
    %2 = arith.cmpi ne, %1, %c0_i32_0 : i32
    scf.if %2 {
      %c0_107 = arith.constant 0 : index
      %c0_108 = arith.constant 0 : index
      %251 = vector.load %arg1[%c0_107, %c0_108] : memref<16x32xf32, #tpu.memory_space<vmem>>, vector<16x32xf32>
      %c0_109 = arith.constant 0 : index
      %c0_110 = arith.constant 0 : index
      %252 = vector.load %arg3[%c0_109, %c0_110] : memref<1x32xf32, #tpu.memory_space<vmem>>, vector<1x32xf32>
      %c0_111 = arith.constant 0 : index
      %c0_112 = arith.constant 0 : index
      %253 = vector.load %arg4[%c0_111, %c0_112] : memref<1x32xf32, #tpu.memory_space<vmem>>, vector<1x32xf32>
      %cst_113 = arith.constant dense<0.000000e+00> : vector<16xf32>
      %254 = vector.multi_reduction <add>, %251, %cst_113 [1] : vector<16x32xf32> to vector<16xf32>
      %255 = vector.shape_cast %254 : vector<16xf32> to vector<16x1xf32>
      %cst_114 = arith.constant 3.200000e+01 : f32
      %256 = vector.broadcast %cst_114 : f32 to vector<16x1xf32>
      %257 = arith.divf %255, %256 : vector<16x1xf32>
      %258 = vector.broadcast %257 : vector<16x1xf32> to vector<16x32xf32>
      %259 = arith.subf %251, %258 : vector<16x32xf32>
      %260 = arith.mulf %259, %259 : vector<16x32xf32>
      %cst_115 = arith.constant dense<0.000000e+00> : vector<16xf32>
      %261 = vector.multi_reduction <add>, %260, %cst_115 [1] : vector<16x32xf32> to vector<16xf32>
      %262 = vector.shape_cast %261 : vector<16xf32> to vector<16x1xf32>
      %cst_116 = arith.constant 3.200000e+01 : f32
      %263 = vector.broadcast %cst_116 : f32 to vector<16x1xf32>
      %264 = arith.divf %262, %263 : vector<16x1xf32>
      %265 = vector.broadcast %257 : vector<16x1xf32> to vector<16x32xf32>
      %266 = arith.subf %251, %265 : vector<16x32xf32>
      %cst_117 = arith.constant 9.99999996E-13 : f32
      %267 = vector.broadcast %cst_117 : f32 to vector<16x1xf32>
      %268 = arith.addf %264, %267 : vector<16x1xf32>
      %269 = math.rsqrt %268 : vector<16x1xf32>
      %270 = vector.broadcast %269 : vector<16x1xf32> to vector<16x32xf32>
      %271 = arith.mulf %266, %270 : vector<16x32xf32>
      %272 = vector.broadcast %252 : vector<1x32xf32> to vector<16x32xf32>
      %273 = arith.mulf %271, %272 : vector<16x32xf32>
      %274 = vector.broadcast %253 : vector<1x32xf32> to vector<16x32xf32>
      %275 = arith.addf %273, %274 : vector<16x32xf32>
      %c0_118 = arith.constant 0 : index
      %c0_119 = arith.constant 0 : index
      %276 = vector.load %arg20[%c0_118, %c0_119] : memref<16x32xf32, #tpu.memory_space<vmem>>, vector<16x32xf32>
      tpu.vector_store %arg20[%c0_118, %c0_119], %275 {strides = array<i32>} : memref<16x32xf32, #tpu.memory_space<vmem>>, vector<16x32xf32>,
    } else {
    }
    %c0 = arith.constant 0 : index
    %c0_1 = arith.constant 0 : index
    %3 = vector.load %arg20[%c0, %c0_1] : memref<16x32xf32, #tpu.memory_space<vmem>>, vector<16x32xf32>
    %4 = arith.truncf %3 : vector<16x32xf32> to vector<16x32xbf16>
    %c0_2 = arith.constant 0 : index
    %c0_3 = arith.constant 0 : index
    %c0_4 = arith.constant 0 : index
    %5 = vector.load %arg5[%c0_2, %c0_3, %c0_4] : memref<1x32x96xbf16, #tpu.memory_space<vmem>>, vector<1x32x96xbf16>
    %6 = vector.shape_cast %5 : vector<1x32x96xbf16> to vector<32x96xbf16>
    %cst = arith.constant dense<0.000000e+00> : vector<16x96xf32>
    %7 = tpu.matmul %4, %6, %cst {dimension_numbers = #tpu.dot_dimension_numbers<[1], [0], [0], [1], [0, 0, 1, 1], [], []>} : vector<16x32xbf16>, vector<32x96xbf16>, vector<16x96xf32> -> vector<16x96xf32>
    %c0_5 = arith.constant 0 : index
    %c0_6 = arith.constant 0 : index
    %c0_7 = arith.constant 0 : index
    %8 = vector.load %arg6[%c0_5, %c0_6, %c0_7] : memref<1x1x96xf32, #tpu.memory_space<vmem>>, vector<1x1x96xf32>
    %9 = vector.shape_cast %8 : vector<1x1x96xf32> to vector<1x96xf32>
    %10 = vector.broadcast %9 : vector<1x96xf32> to vector<16x96xf32>
    %11 = arith.addf %7, %10 : vector<16x96xf32>
    %12 = vector.extract_strided_slice %11 {offsets = [0, 0], sizes = [8, 96], strides = [1, 1]} : vector<16x96xf32> to vector<8x96xf32>
    %c0_8 = arith.constant 0 : index
    %c0_9 = arith.constant 0 : index
    %13 = vector.load %arg2[%c0_8, %c0_9] : memref<2x8xf32, #tpu.memory_space<vmem>>, vector<1x8xf32>
    %14 = vector.extract_strided_slice %12 {offsets = [0, 0], sizes = [8, 8], strides = [1, 1]} : vector<8x96xf32> to vector<8x8xf32>
    %15 = vector.extract_strided_slice %12 {offsets = [0, 32], sizes = [8, 8], strides = [1, 1]} : vector<8x96xf32> to vector<8x8xf32>
    %16 = vector.extract_strided_slice %12 {offsets = [0, 64], sizes = [8, 8], strides = [1, 1]} : vector<8x96xf32> to vector<8x8xf32>
    %cst_10 = arith.constant dense<0.000000e+00> : vector<8x8xf32>
    %17 = tpu.matmul %14, %15, %cst_10 {dimension_numbers = #tpu.dot_dimension_numbers<[1], [1], [0], [0], [0, 0, 1, 0], [], []>} : vector<8x8xf32>, vector<8x8xf32>, vector<8x8xf32> -> vector<8x8xf32>
    %18 = vector.broadcast %13 : vector<1x8xf32> to vector<8x8xf32>
    %19 = arith.addf %17, %18 : vector<8x8xf32>
    %cst_11 = arith.constant dense<0xFF800000> : vector<8xf32>
    %20 = vector.multi_reduction <maximumf>, %19, %cst_11 [1] : vector<8x8xf32> to vector<8xf32>
    %21 = vector.shape_cast %20 : vector<8xf32> to vector<8x1xf32>
    %22 = vector.broadcast %21 : vector<8x1xf32> to vector<8x8xf32>
    %23 = arith.subf %19, %22 : vector<8x8xf32>
    %24 = math.exp %23 : vector<8x8xf32>
    %cst_12 = arith.constant dense<0.000000e+00> : vector<8xf32>
    %25 = vector.multi_reduction <add>, %24, %cst_12 [1] : vector<8x8xf32> to vector<8xf32>
    %26 = vector.shape_cast %25 : vector<8xf32> to vector<8x1xf32>
    %27 = tpu.reciprocal %26 {approx = true} : vector<8x1xf32> -> vector<8x1xf32>
    %28 = vector.broadcast %27 : vector<8x1xf32> to vector<8x8xf32>
    %29 = arith.mulf %24, %28 : vector<8x8xf32>
    %cst_13 = arith.constant dense<0.000000e+00> : vector<8x8xf32>
    %30 = tpu.matmul %29, %16, %cst_13 {dimension_numbers = #tpu.dot_dimension_numbers<[1], [0], [0], [1], [0, 0, 1, 1], [], []>} : vector<8x8xf32>, vector<8x8xf32>, vector<8x8xf32> -> vector<8x8xf32>
    %c0_14 = arith.constant 0 : index
    %c0_15 = arith.constant 0 : index
    %31 = vector.load %arg21[%c0_14, %c0_15] : memref<16x32xf32, #tpu.memory_space<vmem>>, vector<8x8xf32>
    tpu.vector_store %arg21[%c0_14, %c0_15], %30 {strides = array<i32>} : memref<16x32xf32, #tpu.memory_space<vmem>>, vector<8x8xf32>,
    %32 = vector.extract_strided_slice %12 {offsets = [0, 8], sizes = [8, 8], strides = [1, 1]} : vector<8x96xf32> to vector<8x8xf32>
    %33 = vector.extract_strided_slice %12 {offsets = [0, 40], sizes = [8, 8], strides = [1, 1]} : vector<8x96xf32> to vector<8x8xf32>
    %34 = vector.extract_strided_slice %12 {offsets = [0, 72], sizes = [8, 8], strides = [1, 1]} : vector<8x96xf32> to vector<8x8xf32>
    %cst_16 = arith.constant dense<0.000000e+00> : vector<8x8xf32>
    %35 = tpu.matmul %32, %33, %cst_16 {dimension_numbers = #tpu.dot_dimension_numbers<[1], [1], [0], [0], [0, 0, 1, 0], [], []>} : vector<8x8xf32>, vector<8x8xf32>, vector<8x8xf32> -> vector<8x8xf32>
    %36 = vector.broadcast %13 : vector<1x8xf32> to vector<8x8xf32>
    %37 = arith.addf %35, %36 : vector<8x8xf32>
    %cst_17 = arith.constant dense<0xFF800000> : vector<8xf32>
    %38 = vector.multi_reduction <maximumf>, %37, %cst_17 [1] : vector<8x8xf32> to vector<8xf32>
    %39 = vector.shape_cast %38 : vector<8xf32> to vector<8x1xf32>
    %40 = vector.broadcast %39 : vector<8x1xf32> to vector<8x8xf32>
    %41 = arith.subf %37, %40 : vector<8x8xf32>
    %42 = math.exp %41 : vector<8x8xf32>
    %cst_18 = arith.constant dense<0.000000e+00> : vector<8xf32>
    %43 = vector.multi_reduction <add>, %42, %cst_18 [1] : vector<8x8xf32> to vector<8xf32>
    %44 = vector.shape_cast %43 : vector<8xf32> to vector<8x1xf32>
    %45 = tpu.reciprocal %44 {approx = true} : vector<8x1xf32> -> vector<8x1xf32>
    %46 = vector.broadcast %45 : vector<8x1xf32> to vector<8x8xf32>
    %47 = arith.mulf %42, %46 : vector<8x8xf32>
    %cst_19 = arith.constant dense<0.000000e+00> : vector<8x8xf32>
    %48 = tpu.matmul %47, %34, %cst_19 {dimension_numbers = #tpu.dot_dimension_numbers<[1], [0], [0], [1], [0, 0, 1, 1], [], []>} : vector<8x8xf32>, vector<8x8xf32>, vector<8x8xf32> -> vector<8x8xf32>
    %c0_20 = arith.constant 0 : index
    %c8 = arith.constant 8 : index
    %49 = vector.load %arg21[%c0_20, %c8] : memref<16x32xf32, #tpu.memory_space<vmem>>, vector<8x8xf32>
    tpu.vector_store %arg21[%c0_20, %c8], %48 {strides = array<i32>} : memref<16x32xf32, #tpu.memory_space<vmem>>, vector<8x8xf32>,
    %50 = vector.extract_strided_slice %12 {offsets = [0, 16], sizes = [8, 8], strides = [1, 1]} : vector<8x96xf32> to vector<8x8xf32>
    %51 = vector.extract_strided_slice %12 {offsets = [0, 48], sizes = [8, 8], strides = [1, 1]} : vector<8x96xf32> to vector<8x8xf32>
    %52 = vector.extract_strided_slice %12 {offsets = [0, 80], sizes = [8, 8], strides = [1, 1]} : vector<8x96xf32> to vector<8x8xf32>
    %cst_21 = arith.constant dense<0.000000e+00> : vector<8x8xf32>
    %53 = tpu.matmul %50, %51, %cst_21 {dimension_numbers = #tpu.dot_dimension_numbers<[1], [1], [0], [0], [0, 0, 1, 0], [], []>} : vector<8x8xf32>, vector<8x8xf32>, vector<8x8xf32> -> vector<8x8xf32>
    %54 = vector.broadcast %13 : vector<1x8xf32> to vector<8x8xf32>
    %55 = arith.addf %53, %54 : vector<8x8xf32>
    %cst_22 = arith.constant dense<0xFF800000> : vector<8xf32>
    %56 = vector.multi_reduction <maximumf>, %55, %cst_22 [1] : vector<8x8xf32> to vector<8xf32>
    %57 = vector.shape_cast %56 : vector<8xf32> to vector<8x1xf32>
    %58 = vector.broadcast %57 : vector<8x1xf32> to vector<8x8xf32>
    %59 = arith.subf %55, %58 : vector<8x8xf32>
    %60 = math.exp %59 : vector<8x8xf32>
    %cst_23 = arith.constant dense<0.000000e+00> : vector<8xf32>
    %61 = vector.multi_reduction <add>, %60, %cst_23 [1] : vector<8x8xf32> to vector<8xf32>
    %62 = vector.shape_cast %61 : vector<8xf32> to vector<8x1xf32>
    %63 = tpu.reciprocal %62 {approx = true} : vector<8x1xf32> -> vector<8x1xf32>
    %64 = vector.broadcast %63 : vector<8x1xf32> to vector<8x8xf32>
    %65 = arith.mulf %60, %64 : vector<8x8xf32>
    %cst_24 = arith.constant dense<0.000000e+00> : vector<8x8xf32>
    %66 = tpu.matmul %65, %52, %cst_24 {dimension_numbers = #tpu.dot_dimension_numbers<[1], [0], [0], [1], [0, 0, 1, 1], [], []>} : vector<8x8xf32>, vector<8x8xf32>, vector<8x8xf32> -> vector<8x8xf32>
    %c0_25 = arith.constant 0 : index
    %c16 = arith.constant 16 : index
    %67 = vector.load %arg21[%c0_25, %c16] : memref<16x32xf32, #tpu.memory_space<vmem>>, vector<8x8xf32>
    tpu.vector_store %arg21[%c0_25, %c16], %66 {strides = array<i32>} : memref<16x32xf32, #tpu.memory_space<vmem>>, vector<8x8xf32>,
    %68 = vector.extract_strided_slice %12 {offsets = [0, 24], sizes = [8, 8], strides = [1, 1]} : vector<8x96xf32> to vector<8x8xf32>
    %69 = vector.extract_strided_slice %12 {offsets = [0, 56], sizes = [8, 8], strides = [1, 1]} : vector<8x96xf32> to vector<8x8xf32>
    %70 = vector.extract_strided_slice %12 {offsets = [0, 88], sizes = [8, 8], strides = [1, 1]} : vector<8x96xf32> to vector<8x8xf32>
    %cst_26 = arith.constant dense<0.000000e+00> : vector<8x8xf32>
    %71 = tpu.matmul %68, %69, %cst_26 {dimension_numbers = #tpu.dot_dimension_numbers<[1], [1], [0], [0], [0, 0, 1, 0], [], []>} : vector<8x8xf32>, vector<8x8xf32>, vector<8x8xf32> -> vector<8x8xf32>
    %72 = vector.broadcast %13 : vector<1x8xf32> to vector<8x8xf32>
    %73 = arith.addf %71, %72 : vector<8x8xf32>
    %cst_27 = arith.constant dense<0xFF800000> : vector<8xf32>
    %74 = vector.multi_reduction <maximumf>, %73, %cst_27 [1] : vector<8x8xf32> to vector<8xf32>
    %75 = vector.shape_cast %74 : vector<8xf32> to vector<8x1xf32>
    %76 = vector.broadcast %75 : vector<8x1xf32> to vector<8x8xf32>
    %77 = arith.subf %73, %76 : vector<8x8xf32>
    %78 = math.exp %77 : vector<8x8xf32>
    %cst_28 = arith.constant dense<0.000000e+00> : vector<8xf32>
    %79 = vector.multi_reduction <add>, %78, %cst_28 [1] : vector<8x8xf32> to vector<8xf32>
    %80 = vector.shape_cast %79 : vector<8xf32> to vector<8x1xf32>
    %81 = tpu.reciprocal %80 {approx = true} : vector<8x1xf32> -> vector<8x1xf32>
    %82 = vector.broadcast %81 : vector<8x1xf32> to vector<8x8xf32>
    %83 = arith.mulf %78, %82 : vector<8x8xf32>
    %cst_29 = arith.constant dense<0.000000e+00> : vector<8x8xf32>
    %84 = tpu.matmul %83, %70, %cst_29 {dimension_numbers = #tpu.dot_dimension_numbers<[1], [0], [0], [1], [0, 0, 1, 1], [], []>} : vector<8x8xf32>, vector<8x8xf32>, vector<8x8xf32> -> vector<8x8xf32>
    %c0_30 = arith.constant 0 : index
    %c24 = arith.constant 24 : index
    %85 = vector.load %arg21[%c0_30, %c24] : memref<16x32xf32, #tpu.memory_space<vmem>>, vector<8x8xf32>
    tpu.vector_store %arg21[%c0_30, %c24], %84 {strides = array<i32>} : memref<16x32xf32, #tpu.memory_space<vmem>>, vector<8x8xf32>,
    %86 = vector.extract_strided_slice %11 {offsets = [8, 0], sizes = [8, 96], strides = [1, 1]} : vector<16x96xf32> to vector<8x96xf32>
    %c1 = arith.constant 1 : index
    %c0_31 = arith.constant 0 : index
    %87 = vector.load %arg2[%c1, %c0_31] : memref<2x8xf32, #tpu.memory_space<vmem>>, vector<1x8xf32>
    %88 = vector.extract_strided_slice %86 {offsets = [0, 0], sizes = [8, 8], strides = [1, 1]} : vector<8x96xf32> to vector<8x8xf32>
    %89 = vector.extract_strided_slice %86 {offsets = [0, 32], sizes = [8, 8], strides = [1, 1]} : vector<8x96xf32> to vector<8x8xf32>
    %90 = vector.extract_strided_slice %86 {offsets = [0, 64], sizes = [8, 8], strides = [1, 1]} : vector<8x96xf32> to vector<8x8xf32>
    %cst_32 = arith.constant dense<0.000000e+00> : vector<8x8xf32>
    %91 = tpu.matmul %88, %89, %cst_32 {dimension_numbers = #tpu.dot_dimension_numbers<[1], [1], [0], [0], [0, 0, 1, 0], [], []>} : vector<8x8xf32>, vector<8x8xf32>, vector<8x8xf32> -> vector<8x8xf32>
    %92 = vector.broadcast %87 : vector<1x8xf32> to vector<8x8xf32>
    %93 = arith.addf %91, %92 : vector<8x8xf32>
    %cst_33 = arith.constant dense<0xFF800000> : vector<8xf32>
    %94 = vector.multi_reduction <maximumf>, %93, %cst_33 [1] : vector<8x8xf32> to vector<8xf32>
    %95 = vector.shape_cast %94 : vector<8xf32> to vector<8x1xf32>
    %96 = vector.broadcast %95 : vector<8x1xf32> to vector<8x8xf32>
    %97 = arith.subf %93, %96 : vector<8x8xf32>
    %98 = math.exp %97 : vector<8x8xf32>
    %cst_34 = arith.constant dense<0.000000e+00> : vector<8xf32>
    %99 = vector.multi_reduction <add>, %98, %cst_34 [1] : vector<8x8xf32> to vector<8xf32>
    %100 = vector.shape_cast %99 : vector<8xf32> to vector<8x1xf32>
    %101 = tpu.reciprocal %100 {approx = true} : vector<8x1xf32> -> vector<8x1xf32>
    %102 = vector.broadcast %101 : vector<8x1xf32> to vector<8x8xf32>
    %103 = arith.mulf %98, %102 : vector<8x8xf32>
    %cst_35 = arith.constant dense<0.000000e+00> : vector<8x8xf32>
    %104 = tpu.matmul %103, %90, %cst_35 {dimension_numbers = #tpu.dot_dimension_numbers<[1], [0], [0], [1], [0, 0, 1, 1], [], []>} : vector<8x8xf32>, vector<8x8xf32>, vector<8x8xf32> -> vector<8x8xf32>
    %c8_36 = arith.constant 8 : index
    %c0_37 = arith.constant 0 : index
    %105 = vector.load %arg21[%c8_36, %c0_37] : memref<16x32xf32, #tpu.memory_space<vmem>>, vector<8x8xf32>
    tpu.vector_store %arg21[%c8_36, %c0_37], %104 {strides = array<i32>} : memref<16x32xf32, #tpu.memory_space<vmem>>, vector<8x8xf32>,
    %106 = vector.extract_strided_slice %86 {offsets = [0, 8], sizes = [8, 8], strides = [1, 1]} : vector<8x96xf32> to vector<8x8xf32>
    %107 = vector.extract_strided_slice %86 {offsets = [0, 40], sizes = [8, 8], strides = [1, 1]} : vector<8x96xf32> to vector<8x8xf32>
    %108 = vector.extract_strided_slice %86 {offsets = [0, 72], sizes = [8, 8], strides = [1, 1]} : vector<8x96xf32> to vector<8x8xf32>
    %cst_38 = arith.constant dense<0.000000e+00> : vector<8x8xf32>
    %109 = tpu.matmul %106, %107, %cst_38 {dimension_numbers = #tpu.dot_dimension_numbers<[1], [1], [0], [0], [0, 0, 1, 0], [], []>} : vector<8x8xf32>, vector<8x8xf32>, vector<8x8xf32> -> vector<8x8xf32>
    %110 = vector.broadcast %87 : vector<1x8xf32> to vector<8x8xf32>
    %111 = arith.addf %109, %110 : vector<8x8xf32>
    %cst_39 = arith.constant dense<0xFF800000> : vector<8xf32>
    %112 = vector.multi_reduction <maximumf>, %111, %cst_39 [1] : vector<8x8xf32> to vector<8xf32>
    %113 = vector.shape_cast %112 : vector<8xf32> to vector<8x1xf32>
    %114 = vector.broadcast %113 : vector<8x1xf32> to vector<8x8xf32>
    %115 = arith.subf %111, %114 : vector<8x8xf32>
    %116 = math.exp %115 : vector<8x8xf32>
    %cst_40 = arith.constant dense<0.000000e+00> : vector<8xf32>
    %117 = vector.multi_reduction <add>, %116, %cst_40 [1] : vector<8x8xf32> to vector<8xf32>
    %118 = vector.shape_cast %117 : vector<8xf32> to vector<8x1xf32>
    %119 = tpu.reciprocal %118 {approx = true} : vector<8x1xf32> -> vector<8x1xf32>
    %120 = vector.broadcast %119 : vector<8x1xf32> to vector<8x8xf32>
    %121 = arith.mulf %116, %120 : vector<8x8xf32>
    %cst_41 = arith.constant dense<0.000000e+00> : vector<8x8xf32>
    %122 = tpu.matmul %121, %108, %cst_41 {dimension_numbers = #tpu.dot_dimension_numbers<[1], [0], [0], [1], [0, 0, 1, 1], [], []>} : vector<8x8xf32>, vector<8x8xf32>, vector<8x8xf32> -> vector<8x8xf32>
    %c8_42 = arith.constant 8 : index
    %c8_43 = arith.constant 8 : index
    %123 = vector.load %arg21[%c8_42, %c8_43] : memref<16x32xf32, #tpu.memory_space<vmem>>, vector<8x8xf32>
    tpu.vector_store %arg21[%c8_42, %c8_43], %122 {strides = array<i32>} : memref<16x32xf32, #tpu.memory_space<vmem>>, vector<8x8xf32>,
    %124 = vector.extract_strided_slice %86 {offsets = [0, 16], sizes = [8, 8], strides = [1, 1]} : vector<8x96xf32> to vector<8x8xf32>
    %125 = vector.extract_strided_slice %86 {offsets = [0, 48], sizes = [8, 8], strides = [1, 1]} : vector<8x96xf32> to vector<8x8xf32>
    %126 = vector.extract_strided_slice %86 {offsets = [0, 80], sizes = [8, 8], strides = [1, 1]} : vector<8x96xf32> to vector<8x8xf32>
    %cst_44 = arith.constant dense<0.000000e+00> : vector<8x8xf32>
    %127 = tpu.matmul %124, %125, %cst_44 {dimension_numbers = #tpu.dot_dimension_numbers<[1], [1], [0], [0], [0, 0, 1, 0], [], []>} : vector<8x8xf32>, vector<8x8xf32>, vector<8x8xf32> -> vector<8x8xf32>
    %128 = vector.broadcast %87 : vector<1x8xf32> to vector<8x8xf32>
    %129 = arith.addf %127, %128 : vector<8x8xf32>
    %cst_45 = arith.constant dense<0xFF800000> : vector<8xf32>
    %130 = vector.multi_reduction <maximumf>, %129, %cst_45 [1] : vector<8x8xf32> to vector<8xf32>
    %131 = vector.shape_cast %130 : vector<8xf32> to vector<8x1xf32>
    %132 = vector.broadcast %131 : vector<8x1xf32> to vector<8x8xf32>
    %133 = arith.subf %129, %132 : vector<8x8xf32>
    %134 = math.exp %133 : vector<8x8xf32>
    %cst_46 = arith.constant dense<0.000000e+00> : vector<8xf32>
    %135 = vector.multi_reduction <add>, %134, %cst_46 [1] : vector<8x8xf32> to vector<8xf32>
    %136 = vector.shape_cast %135 : vector<8xf32> to vector<8x1xf32>
    %137 = tpu.reciprocal %136 {approx = true} : vector<8x1xf32> -> vector<8x1xf32>
    %138 = vector.broadcast %137 : vector<8x1xf32> to vector<8x8xf32>
    %139 = arith.mulf %134, %138 : vector<8x8xf32>
    %cst_47 = arith.constant dense<0.000000e+00> : vector<8x8xf32>
    %140 = tpu.matmul %139, %126, %cst_47 {dimension_numbers = #tpu.dot_dimension_numbers<[1], [0], [0], [1], [0, 0, 1, 1], [], []>} : vector<8x8xf32>, vector<8x8xf32>, vector<8x8xf32> -> vector<8x8xf32>
    %c8_48 = arith.constant 8 : index
    %c16_49 = arith.constant 16 : index
    %141 = vector.load %arg21[%c8_48, %c16_49] : memref<16x32xf32, #tpu.memory_space<vmem>>, vector<8x8xf32>
    tpu.vector_store %arg21[%c8_48, %c16_49], %140 {strides = array<i32>} : memref<16x32xf32, #tpu.memory_space<vmem>>, vector<8x8xf32>,
    %142 = vector.extract_strided_slice %86 {offsets = [0, 24], sizes = [8, 8], strides = [1, 1]} : vector<8x96xf32> to vector<8x8xf32>
    %143 = vector.extract_strided_slice %86 {offsets = [0, 56], sizes = [8, 8], strides = [1, 1]} : vector<8x96xf32> to vector<8x8xf32>
    %144 = vector.extract_strided_slice %86 {offsets = [0, 88], sizes = [8, 8], strides = [1, 1]} : vector<8x96xf32> to vector<8x8xf32>
    %cst_50 = arith.constant dense<0.000000e+00> : vector<8x8xf32>
    %145 = tpu.matmul %142, %143, %cst_50 {dimension_numbers = #tpu.dot_dimension_numbers<[1], [1], [0], [0], [0, 0, 1, 0], [], []>} : vector<8x8xf32>, vector<8x8xf32>, vector<8x8xf32> -> vector<8x8xf32>
    %146 = vector.broadcast %87 : vector<1x8xf32> to vector<8x8xf32>
    %147 = arith.addf %145, %146 : vector<8x8xf32>
    %cst_51 = arith.constant dense<0xFF800000> : vector<8xf32>
    %148 = vector.multi_reduction <maximumf>, %147, %cst_51 [1] : vector<8x8xf32> to vector<8xf32>
    %149 = vector.shape_cast %148 : vector<8xf32> to vector<8x1xf32>
    %150 = vector.broadcast %149 : vector<8x1xf32> to vector<8x8xf32>
    %151 = arith.subf %147, %150 : vector<8x8xf32>
    %152 = math.exp %151 : vector<8x8xf32>
    %cst_52 = arith.constant dense<0.000000e+00> : vector<8xf32>
    %153 = vector.multi_reduction <add>, %152, %cst_52 [1] : vector<8x8xf32> to vector<8xf32>
    %154 = vector.shape_cast %153 : vector<8xf32> to vector<8x1xf32>
    %155 = tpu.reciprocal %154 {approx = true} : vector<8x1xf32> -> vector<8x1xf32>
    %156 = vector.broadcast %155 : vector<8x1xf32> to vector<8x8xf32>
    %157 = arith.mulf %152, %156 : vector<8x8xf32>
    %cst_53 = arith.constant dense<0.000000e+00> : vector<8x8xf32>
    %158 = tpu.matmul %157, %144, %cst_53 {dimension_numbers = #tpu.dot_dimension_numbers<[1], [0], [0], [1], [0, 0, 1, 1], [], []>} : vector<8x8xf32>, vector<8x8xf32>, vector<8x8xf32> -> vector<8x8xf32>
    %c8_54 = arith.constant 8 : index
    %c24_55 = arith.constant 24 : index
    %159 = vector.load %arg21[%c8_54, %c24_55] : memref<16x32xf32, #tpu.memory_space<vmem>>, vector<8x8xf32>
    tpu.vector_store %arg21[%c8_54, %c24_55], %158 {strides = array<i32>} : memref<16x32xf32, #tpu.memory_space<vmem>>, vector<8x8xf32>,
    %c0_56 = arith.constant 0 : index
    %c0_57 = arith.constant 0 : index
    %160 = vector.load %arg21[%c0_56, %c0_57] : memref<16x32xf32, #tpu.memory_space<vmem>>, vector<16x32xf32>
    %161 = arith.truncf %160 : vector<16x32xf32> to vector<16x32xbf16>
    %c0_58 = arith.constant 0 : index
    %c0_59 = arith.constant 0 : index
    %c0_60 = arith.constant 0 : index
    %162 = vector.load %arg7[%c0_58, %c0_59, %c0_60] : memref<1x32x32xbf16, #tpu.memory_space<vmem>>, vector<1x32x32xbf16>
    %163 = vector.shape_cast %162 : vector<1x32x32xbf16> to vector<32x32xbf16>
    %cst_61 = arith.constant dense<0.000000e+00> : vector<16x32xf32>
    %164 = tpu.matmul %161, %163, %cst_61 {dimension_numbers = #tpu.dot_dimension_numbers<[1], [0], [0], [1], [0, 0, 1, 1], [], []>} : vector<16x32xbf16>, vector<32x32xbf16>, vector<16x32xf32> -> vector<16x32xf32>
    %c0_62 = arith.constant 0 : index
    %c0_63 = arith.constant 0 : index
    %c0_64 = arith.constant 0 : index
    %165 = vector.load %arg8[%c0_62, %c0_63, %c0_64] : memref<1x1x32xf32, #tpu.memory_space<vmem>>, vector<1x1x32xf32>
    %166 = vector.shape_cast %165 : vector<1x1x32xf32> to vector<1x32xf32>
    %167 = vector.broadcast %166 : vector<1x32xf32> to vector<16x32xf32>
    %168 = arith.addf %164, %167 : vector<16x32xf32>
    %169 = arith.addf %168, %3 : vector<16x32xf32>
    %c0_65 = arith.constant 0 : index
    %c0_66 = arith.constant 0 : index
    %c0_67 = arith.constant 0 : index
    %170 = vector.load %arg9[%c0_65, %c0_66, %c0_67] : memref<1x1x32xf32, #tpu.memory_space<vmem>>, vector<1x1x32xf32>
    %171 = vector.shape_cast %170 : vector<1x1x32xf32> to vector<1x32xf32>
    %c0_68 = arith.constant 0 : index
    %c0_69 = arith.constant 0 : index
    %c0_70 = arith.constant 0 : index
    %172 = vector.load %arg10[%c0_68, %c0_69, %c0_70] : memref<1x1x32xf32, #tpu.memory_space<vmem>>, vector<1x1x32xf32>
    %173 = vector.shape_cast %172 : vector<1x1x32xf32> to vector<1x32xf32>
    %cst_71 = arith.constant dense<0.000000e+00> : vector<16xf32>
    %174 = vector.multi_reduction <add>, %169, %cst_71 [1] : vector<16x32xf32> to vector<16xf32>
    %175 = vector.shape_cast %174 : vector<16xf32> to vector<16x1xf32>
    %cst_72 = arith.constant 3.200000e+01 : f32
    %176 = vector.broadcast %cst_72 : f32 to vector<16x1xf32>
    %177 = arith.divf %175, %176 : vector<16x1xf32>
    %178 = vector.broadcast %177 : vector<16x1xf32> to vector<16x32xf32>
    %179 = arith.subf %169, %178 : vector<16x32xf32>
    %180 = arith.mulf %179, %179 : vector<16x32xf32>
    %cst_73 = arith.constant dense<0.000000e+00> : vector<16xf32>
    %181 = vector.multi_reduction <add>, %180, %cst_73 [1] : vector<16x32xf32> to vector<16xf32>
    %182 = vector.shape_cast %181 : vector<16xf32> to vector<16x1xf32>
    %cst_74 = arith.constant 3.200000e+01 : f32
    %183 = vector.broadcast %cst_74 : f32 to vector<16x1xf32>
    %184 = arith.divf %182, %183 : vector<16x1xf32>
    %185 = vector.broadcast %177 : vector<16x1xf32> to vector<16x32xf32>
    %186 = arith.subf %169, %185 : vector<16x32xf32>
    %cst_75 = arith.constant 9.99999996E-13 : f32
    %187 = vector.broadcast %cst_75 : f32 to vector<16x1xf32>
    %188 = arith.addf %184, %187 : vector<16x1xf32>
    %189 = math.rsqrt %188 : vector<16x1xf32>
    %190 = vector.broadcast %189 : vector<16x1xf32> to vector<16x32xf32>
    %191 = arith.mulf %186, %190 : vector<16x32xf32>
    %192 = vector.broadcast %171 : vector<1x32xf32> to vector<16x32xf32>
    %193 = arith.mulf %191, %192 : vector<16x32xf32>
    %194 = vector.broadcast %173 : vector<1x32xf32> to vector<16x32xf32>
    %195 = arith.addf %193, %194 : vector<16x32xf32>
    %196 = arith.truncf %195 : vector<16x32xf32> to vector<16x32xbf16>
    %c0_76 = arith.constant 0 : index
    %c0_77 = arith.constant 0 : index
    %c0_78 = arith.constant 0 : index
    %197 = vector.load %arg11[%c0_76, %c0_77, %c0_78] : memref<1x32x64xbf16, #tpu.memory_space<vmem>>, vector<1x32x64xbf16>
    %198 = vector.shape_cast %197 : vector<1x32x64xbf16> to vector<32x64xbf16>
    %cst_79 = arith.constant dense<0.000000e+00> : vector<16x64xf32>
    %199 = tpu.matmul %196, %198, %cst_79 {dimension_numbers = #tpu.dot_dimension_numbers<[1], [0], [0], [1], [0, 0, 1, 1], [], []>} : vector<16x32xbf16>, vector<32x64xbf16>, vector<16x64xf32> -> vector<16x64xf32>
    %c0_80 = arith.constant 0 : index
    %c0_81 = arith.constant 0 : index
    %c0_82 = arith.constant 0 : index
    %200 = vector.load %arg12[%c0_80, %c0_81, %c0_82] : memref<1x1x64xf32, #tpu.memory_space<vmem>>, vector<1x1x64xf32>
    %201 = vector.shape_cast %200 : vector<1x1x64xf32> to vector<1x64xf32>
    %202 = vector.broadcast %201 : vector<1x64xf32> to vector<16x64xf32>
    %203 = arith.addf %199, %202 : vector<16x64xf32>
    %cst_83 = arith.constant 5.000000e-01 : f32
    %204 = vector.broadcast %cst_83 : f32 to vector<16x64xf32>
    %205 = arith.mulf %204, %203 : vector<16x64xf32>
    %cst_84 = arith.constant 0.707106769 : f32
    %206 = vector.broadcast %cst_84 : f32 to vector<16x64xf32>
    %207 = arith.mulf %203, %206 : vector<16x64xf32>
    %208 = math.erf %207 : vector<16x64xf32>
    %cst_85 = arith.constant 1.000000e+00 : f32
    %209 = vector.broadcast %cst_85 : f32 to vector<16x64xf32>
    %210 = arith.addf %209, %208 : vector<16x64xf32>
    %211 = arith.mulf %205, %210 : vector<16x64xf32>
    %212 = arith.truncf %211 : vector<16x64xf32> to vector<16x64xbf16>
    %c0_86 = arith.constant 0 : index
    %c0_87 = arith.constant 0 : index
    %c0_88 = arith.constant 0 : index
    %213 = vector.load %arg13[%c0_86, %c0_87, %c0_88] : memref<1x64x32xbf16, #tpu.memory_space<vmem>>, vector<1x64x32xbf16>
    %214 = vector.shape_cast %213 : vector<1x64x32xbf16> to vector<64x32xbf16>
    %cst_89 = arith.constant dense<0.000000e+00> : vector<16x32xf32>
    %215 = tpu.matmul %212, %214, %cst_89 {dimension_numbers = #tpu.dot_dimension_numbers<[1], [0], [0], [1], [0, 0, 1, 1], [], []>} : vector<16x64xbf16>, vector<64x32xbf16>, vector<16x32xf32> -> vector<16x32xf32>
    %c0_90 = arith.constant 0 : index
    %c0_91 = arith.constant 0 : index
    %c0_92 = arith.constant 0 : index
    %216 = vector.load %arg14[%c0_90, %c0_91, %c0_92] : memref<1x1x32xf32, #tpu.memory_space<vmem>>, vector<1x1x32xf32>
    %217 = vector.shape_cast %216 : vector<1x1x32xf32> to vector<1x32xf32>
    %218 = vector.broadcast %217 : vector<1x32xf32> to vector<16x32xf32>
    %219 = arith.addf %215, %218 : vector<16x32xf32>
    %220 = arith.addf %219, %195 : vector<16x32xf32>
    %c0_93 = arith.constant 0 : index
    %c0_94 = arith.constant 0 : index
    %c0_95 = arith.constant 0 : index
    %221 = vector.load %arg15[%c0_93, %c0_94, %c0_95] : memref<1x1x32xf32, #tpu.memory_space<vmem>>, vector<1x1x32xf32>
    %222 = vector.shape_cast %221 : vector<1x1x32xf32> to vector<1x32xf32>
    %c0_96 = arith.constant 0 : index
    %c0_97 = arith.constant 0 : index
    %c0_98 = arith.constant 0 : index
    %223 = vector.load %arg16[%c0_96, %c0_97, %c0_98] : memref<1x1x32xf32, #tpu.memory_space<vmem>>, vector<1x1x32xf32>
    %224 = vector.shape_cast %223 : vector<1x1x32xf32> to vector<1x32xf32>
    %cst_99 = arith.constant dense<0.000000e+00> : vector<16xf32>
    %225 = vector.multi_reduction <add>, %220, %cst_99 [1] : vector<16x32xf32> to vector<16xf32>
    %226 = vector.shape_cast %225 : vector<16xf32> to vector<16x1xf32>
    %cst_100 = arith.constant 3.200000e+01 : f32
    %227 = vector.broadcast %cst_100 : f32 to vector<16x1xf32>
    %228 = arith.divf %226, %227 : vector<16x1xf32>
    %229 = vector.broadcast %228 : vector<16x1xf32> to vector<16x32xf32>
    %230 = arith.subf %220, %229 : vector<16x32xf32>
    %231 = arith.mulf %230, %230 : vector<16x32xf32>
    %cst_101 = arith.constant dense<0.000000e+00> : vector<16xf32>
    %232 = vector.multi_reduction <add>, %231, %cst_101 [1] : vector<16x32xf32> to vector<16xf32>
    %233 = vector.shape_cast %232 : vector<16xf32> to vector<16x1xf32>
    %cst_102 = arith.constant 3.200000e+01 : f32
    %234 = vector.broadcast %cst_102 : f32 to vector<16x1xf32>
    %235 = arith.divf %233, %234 : vector<16x1xf32>
    %236 = vector.broadcast %228 : vector<16x1xf32> to vector<16x32xf32>
    %237 = arith.subf %220, %236 : vector<16x32xf32>
    %cst_103 = arith.constant 9.99999996E-13 : f32
    %238 = vector.broadcast %cst_103 : f32 to vector<16x1xf32>
    %239 = arith.addf %235, %238 : vector<16x1xf32>
    %240 = math.rsqrt %239 : vector<16x1xf32>
    %241 = vector.broadcast %240 : vector<16x1xf32> to vector<16x32xf32>
    %242 = arith.mulf %237, %241 : vector<16x32xf32>
    %243 = vector.broadcast %222 : vector<1x32xf32> to vector<16x32xf32>
    %244 = arith.mulf %242, %243 : vector<16x32xf32>
    %245 = vector.broadcast %224 : vector<1x32xf32> to vector<16x32xf32>
    %246 = arith.addf %244, %245 : vector<16x32xf32>
    %c0_104 = arith.constant 0 : index
    %c0_105 = arith.constant 0 : index
    %247 = vector.load %arg20[%c0_104, %c0_105] : memref<16x32xf32, #tpu.memory_space<vmem>>, vector<16x32xf32>
    tpu.vector_store %arg20[%c0_104, %c0_105], %246 {strides = array<i32>} : memref<16x32xf32, #tpu.memory_space<vmem>>, vector<16x32xf32>,
    %c1_i32 = arith.constant 1 : i32
    %248 = arith.cmpi eq, %arg0, %c1_i32 : i32
    %249 = arith.extui %248 : i1 to i32
    %c0_i32_106 = arith.constant 0 : i32
    %250 = arith.cmpi ne, %249, %c0_i32_106 : i32
    scf.if %250 {
      %251 = vector.extract_strided_slice %246 {offsets = [0, 0], sizes = [1, 32], strides = [1, 1]} : vector<16x32xf32> to vector<1x32xf32>
      %252 = vector.extract_strided_slice %246 {offsets = [8, 0], sizes = [1, 32], strides = [1, 1]} : vector<16x32xf32> to vector<1x32xf32>
      %253 = tpu.concatenate %251, %252 in 0 : vector<1x32xf32>, vector<1x32xf32> -> vector<2x32xf32>
      %254 = arith.truncf %253 : vector<2x32xf32> to vector<2x32xbf16>
      %c0_107 = arith.constant 0 : index
      %c0_108 = arith.constant 0 : index
      %255 = vector.load %arg17[%c0_107, %c0_108] : memref<32x16xbf16, #tpu.memory_space<vmem>>, vector<32x16xbf16>
      %cst_109 = arith.constant dense<0.000000e+00> : vector<2x16xf32>
      %256 = tpu.matmul %254, %255, %cst_109 {dimension_numbers = #tpu.dot_dimension_numbers<[1], [0], [0], [1], [0, 0, 1, 1], [], []>} : vector<2x32xbf16>, vector<32x16xbf16>, vector<2x16xf32> -> vector<2x16xf32>
      %c0_110 = arith.constant 0 : index
      %c0_111 = arith.constant 0 : index
      %257 = vector.load %arg18[%c0_110, %c0_111] : memref<1x16xf32, #tpu.memory_space<vmem>>, vector<1x16xf32>
      %258 = vector.broadcast %257 : vector<1x16xf32> to vector<2x16xf32>
      %259 = arith.addf %256, %258 : vector<2x16xf32>
      %c0_112 = arith.constant 0 : index
      %c0_113 = arith.constant 0 : index
      %260 = vector.load %arg19[%c0_112, %c0_113] : memref<2x16xf32, #tpu.memory_space<vmem>>, vector<2x16xf32>
      tpu.vector_store %arg19[%c0_112, %c0_113], %259 {strides = array<i32>} : memref<2x16xf32, #tpu.memory_space<vmem>>, vector<2x16xf32>,
    } else {
    }
    return
  }
  func.func @transform_0(%arg0: i32) -> (i32, i32) {
    %c0_i32 = arith.constant 0 : i32
    %c0_i32_0 = arith.constant 0 : i32
    %c0_i32_1 = arith.constant 0 : i32
    return %c0_i32, %c0_i32_0 : i32, i32
  }
  func.func @transform_1(%arg0: i32) -> (i32, i32) {
    %c0_i32 = arith.constant 0 : i32
    %c0_i32_0 = arith.constant 0 : i32
    %c0_i32_1 = arith.constant 0 : i32
    return %c0_i32, %c0_i32_0 : i32, i32
  }
  func.func @transform_2(%arg0: i32) -> (i32, i32) {
    %c0_i32 = arith.constant 0 : i32
    %c0_i32_0 = arith.constant 0 : i32
    %c0_i32_1 = arith.constant 0 : i32
    return %c0_i32, %c0_i32_0 : i32, i32
  }
  func.func @transform_3(%arg0: i32) -> (i32, i32) {
    %c0_i32 = arith.constant 0 : i32
    %c0_i32_0 = arith.constant 0 : i32
    %c0_i32_1 = arith.constant 0 : i32
    return %c0_i32, %c0_i32_0 : i32, i32
  }
  func.func @transform_4(%arg0: i32) -> (i32, i32, i32) {
    %c0_i32 = arith.constant 0 : i32
    %c0_i32_0 = arith.constant 0 : i32
    %c0_i32_1 = arith.constant 0 : i32
    return %arg0, %c0_i32, %c0_i32_0 : i32, i32, i32
  }
  func.func @transform_5(%arg0: i32) -> (i32, i32, i32) {
    %c0_i32 = arith.constant 0 : i32
    %c0_i32_0 = arith.constant 0 : i32
    %c0_i32_1 = arith.constant 0 : i32
    return %arg0, %c0_i32, %c0_i32_0 : i32, i32, i32
  }
  func.func @transform_6(%arg0: i32) -> (i32, i32, i32) {
    %c0_i32 = arith.constant 0 : i32
    %c0_i32_0 = arith.constant 0 : i32
    %c0_i32_1 = arith.constant 0 : i32
    return %arg0, %c0_i32, %c0_i32_0 : i32, i32, i32
  }
  func.func @transform_7(%arg0: i32) -> (i32, i32, i32) {
    %c0_i32 = arith.constant 0 : i32
    %c0_i32_0 = arith.constant 0 : i32
    %c0_i32_1 = arith.constant 0 : i32
    return %arg0, %c0_i32, %c0_i32_0 : i32, i32, i32
  }
  func.func @transform_8(%arg0: i32) -> (i32, i32, i32) {
    %c0_i32 = arith.constant 0 : i32
    %c0_i32_0 = arith.constant 0 : i32
    %c0_i32_1 = arith.constant 0 : i32
    return %arg0, %c0_i32, %c0_i32_0 : i32, i32, i32
  }
  func.func @transform_9(%arg0: i32) -> (i32, i32, i32) {
    %c0_i32 = arith.constant 0 : i32
    %c0_i32_0 = arith.constant 0 : i32
    %c0_i32_1 = arith.constant 0 : i32
    return %arg0, %c0_i32, %c0_i32_0 : i32, i32, i32
  }
  func.func @transform_10(%arg0: i32) -> (i32, i32, i32) {
    %c0_i32 = arith.constant 0 : i32
    %c0_i32_0 = arith.constant 0 : i32
    %c0_i32_1 = arith.constant 0 : i32
    return %arg0, %c0_i32, %c0_i32_0 : i32, i32, i32
  }
  func.func @transform_11(%arg0: i32) -> (i32, i32, i32) {
    %c0_i32 = arith.constant 0 : i32
    %c0_i32_0 = arith.constant 0 : i32
    %c0_i32_1 = arith.constant 0 : i32
    return %arg0, %c0_i32, %c0_i32_0 : i32, i32, i32
  }
  func.func @transform_12(%arg0: i32) -> (i32, i32, i32) {
    %c0_i32 = arith.constant 0 : i32
    %c0_i32_0 = arith.constant 0 : i32
    %c0_i32_1 = arith.constant 0 : i32
    return %arg0, %c0_i32, %c0_i32_0 : i32, i32, i32
  }
  func.func @transform_13(%arg0: i32) -> (i32, i32, i32) {
    %c0_i32 = arith.constant 0 : i32
    %c0_i32_0 = arith.constant 0 : i32
    %c0_i32_1 = arith.constant 0 : i32
    return %arg0, %c0_i32, %c0_i32_0 : i32, i32, i32
  }
  func.func @transform_14(%arg0: i32) -> (i32, i32, i32) {
    %c0_i32 = arith.constant 0 : i32
    %c0_i32_0 = arith.constant 0 : i32
    %c0_i32_1 = arith.constant 0 : i32
    return %arg0, %c0_i32, %c0_i32_0 : i32, i32, i32
  }
  func.func @transform_15(%arg0: i32) -> (i32, i32, i32) {
    %c0_i32 = arith.constant 0 : i32
    %c0_i32_0 = arith.constant 0 : i32
    %c0_i32_1 = arith.constant 0 : i32
    return %arg0, %c0_i32, %c0_i32_0 : i32, i32, i32
  }
  func.func @transform_16(%arg0: i32) -> (i32, i32) {
    %c0_i32 = arith.constant 0 : i32
    %c0_i32_0 = arith.constant 0 : i32
    %c0_i32_1 = arith.constant 0 : i32
    return %c0_i32, %c0_i32_0 : i32, i32
  }
  func.func @transform_17(%arg0: i32) -> (i32, i32) {
    %c0_i32 = arith.constant 0 : i32
    %c0_i32_0 = arith.constant 0 : i32
    %c0_i32_1 = arith.constant 0 : i32
    return %c0_i32, %c0_i32_0 : i32, i32
  }
  func.func @transform_18(%arg0: i32) -> (i32, i32) {
    %c0_i32 = arith.constant 0 : i32
    %c0_i32_0 = arith.constant 0 : i32
    %c0_i32_1 = arith.constant 0 : i32
    return %c0_i32, %c0_i32_0 : i32, i32
  }
}

</mosaic_0001>

<bundles_post_ra>
// kernel: distilbert_forward.1
= control target key start
LH: loop header
LB: loop body
LE: loop exit
PB: predicated region body
PF: predicated region fallthrough
CT: control target
= control target key end

     0   :  { %s3639_s0 = inlined_call_operand.vmem [shape: f32[16,32], index: 0, kind: input, shape index: {}]   ;;  %s3640_s1 = inlined_call_operand.vmem [shape: f32[2,8], index: 1, kind: input, shape index: {}]   ;;  %s3641_s2 = inlined_call_operand.vmem [shape: f32[1,32], index: 2, kind: input, shape index: {}]   ;;  %s3642_s3 = inlined_call_operand.vmem [shape: f32[1,32], index: 3, kind: input, shape index: {}]   ;;  %s3643_s4 = inlined_call_operand.vmem [shape: bf16[2,32,96], index: 4, kind: input, shape index: {}]   ;;  %s3644_s5 = inlined_call_operand.vmem [shape: f32[2,1,96], index: 5, kind: input, shape index: {}]   ;;  %s3645_s6 = inlined_call_operand.vmem [shape: bf16[2,32,32], index: 6, kind: input, shape index: {}]   ;;  %s3646_s7 = inlined_call_operand.vmem [shape: f32[2,1,32], index: 7, kind: input, shape index: {}]   ;;  %s3647_s8 = inlined_call_operand.vmem [shape: f32[2,1,32], index: 8, kind: input, shape index: {}]   ;;  %s3648_s9 = inlined_call_operand.vmem [shape: f32[2,1,32], index: 9, kind: input, shape index: {}]   ;;  %s3649_s10 = inlined_call_operand.vmem [shape: bf16[2,32,64], index: 10, kind: input, shape index: {}]   ;;  %s3650_s11 = inlined_call_operand.vmem [shape: f32[2,1,64], index: 11, kind: input, shape index: {}]   ;;  %s3651_s12 = inlined_call_operand.vmem [shape: bf16[2,64,32], index: 12, kind: input, shape index: {}]   ;;  %s3652_s13 = inlined_call_operand.vmem [shape: f32[2,1,32], index: 13, kind: input, shape index: {}]   ;;  %s3653_s14 = inlined_call_operand.vmem [shape: f32[2,1,32], index: 14, kind: input, shape index: {}]   ;;  %s3654_s15 = inlined_call_operand.vmem [shape: f32[2,1,32], index: 15, kind: input, shape index: {}]   ;;  %s3655_s16 = inlined_call_operand.vmem [shape: bf16[32,16], index: 16, kind: input, shape index: {}]   ;;  %s3656_s17 = inlined_call_operand.vmem [shape: f32[1,16], index: 17, kind: input, shape index: {}]   ;;  %s3657_s18 = inlined_call_operand.hbm [shape: f32[2,16], index: 18, kind: output, shape index: {}]  }
   0x1   :  { %3664 = sst [smem:[#allocation9_spill]] %s3639_s0 }
   0x2   :  { %3665 = sst [smem:[#allocation10_spill]] %s3640_s1 }
   0x3   :  { %3666 = sst [smem:[#allocation11_spill]] %s3641_s2 }
   0x4   :  { %3667 = sst [smem:[#allocation12_spill]] %s3643_s4 }
   0x5   :  { %3668 = sst [smem:[#allocation13_spill]] %s3645_s6 }
   0x6   :  { %3669 = sst [smem:[#allocation14_spill]] %s3655_s16 }
   0x7   :  { %3670 = sst [smem:[#allocation15_spill]] %s3656_s17 }
   0x8   :  { %3671 = sst [smem:[#allocation16_spill]] %s3657_s18 }
   0x9   :  { %23 = vsyncpa [#allocation5], 0  ;;  %s3278_s27 = smov 0  }
   0xa LB: > { %3672 = sst [smem:[#allocation7_spill]] %s3162_s27  ;;  %s3284_s28 = sadd.s32 4294967295, %s3162_s27   ;;  %s3162_s27 = sphi %s3278_s27, %s29_s27  }
   0xb   : > { %p2787_p0 = scmp.ge.s32.totalorder %s3162_s27, 1  ;;  %p602_p1 = scmp.lt.s32.totalorder %s3162_s27, 3 }
   0xd   : > { %p603_p2 = pnand %p2787_p0, %p602_p1 }
   0xf   : > { %606 = sbr.rel (%p603_p2) target bundleno = 3709 (0xe7d), region = 92 }
  0x16   : > { %p690_p3 = scmp.lt.s32.totalorder %s3284_s28, 1  ;;  %s3673_s4 = sld [smem:[#allocation12_spill]] }
  0x17   : > { %s3674_s6 = sld [smem:[#allocation13_spill]]  ;;  %p2796_p4 = scmp.ne.s32.totalorder %s3284_s28, 0 }
  0x18   : > { %s3290_s29 = scalar_select %p690_p3, %s3284_s28, 1 }
  0x19   : > { %738 = sbr.rel (%p2796_p4) target bundleno = 350 (0x15e), region = 96  ;;  %s3676_s25 = sld [smem:[#allocation9_spill]] (!%p2796_p4)  ;;  %vm743_vm0 = vcmask (!%p2796_p4), 261120   ;;  %v2798_v23 = vld [vmem:[%s3642_s3] ss:$0 sm:$0xff] (!%p2796_p4) }
  0x1a   : > { %s2856_s30 = sshll.u32 %s3290_s29, 4  ;;  %s727_s0 = scalar_lea.vmem %s3652_s13, %s3290_s29 }
  0x1b   : > { %s730_s20 = scalar_lea.vmem %s3653_s14, %s3290_s29  ;;  %s733_s16 = scalar_lea.vmem %s3654_s15, %s3290_s29 }
  0x1c   : > { %s3300_s22 = scalar_lea.vmem %s3673_s4, %s2856_s30  ;;  %s3322_s4 = scalar_lea.vmem %s3649_s10, %s2856_s30 }
  0x1d   : > { %s3305_s24 = scalar_lea.vmem %s3674_s6, %s2856_s30  ;;  %s719_s6 = scalar_lea.vmem %s3650_s11, %s3290_s29 }
  0x1e   : > { %3675 = sst [smem:[#allocation8_spill]] %s3305_s24  ;;  %s2859_s24 = sshll.u32 %s3290_s29, 5 }
  0x1f   : > { %s3332_s27 = scalar_lea.vmem %s3651_s12, %s2859_s24  ;;  %v739_v0 = vld [vmem:[%s3676_s25] sm:$0xff] (!%p2796_p4)  ;;  %v740_v1 = vld [vmem:[%s3676_s25 + $0x8] sm:$0xff] (!%p2796_p4)  ;;  %s3677_s18 = sld [smem:[#allocation11_spill]] (!%p2796_p4) }
  0x20   : > { %v744_v2 = vsel %vm743_vm0, %v739_v0, 0.0  ;;  %v747_v3 = vsel %vm743_vm0, %v740_v1, 0.0 }
  0x21   : > { %745 = vadd.xlane.f32.xlu0 %v744_v2 }
  0x25   : > { %748 = vadd.xlane.f32.xlu0 %v747_v3  ;;  %v2797_v21 = vld [vmem:[%s3677_s18] ss:$0 sm:$0xff] }
  0xae   : > { %v746_v4 = vpop.xlane.xlu0 %745 }
  0xaf   : > { %v751_v5 = vmul.f32 0.03125, %v746_v4 }
  0xb1   : > { %v753_v6 = vsub.f32 %v739_v0, %v751_v5 }
  0xb2   : > { %v749_v7 = vpop.xlane.xlu0 %748 }
  0xb3   : > { %v752_v8 = vmul.f32 0.03125, %v749_v7  ;;  %v755_v9 = vmul.f32 %v753_v6, %v753_v6 }
  0xb5   : > { %v754_v10 = vsub.f32 %v740_v1, %v752_v8  ;;  %v757_v11 = vsel %vm743_vm0, %v755_v9, 0.0 }
  0xb6   : > { %758 = vadd.xlane.f32.xlu1 %v757_v11 }
  0xb7   : > { %v756_v12 = vmul.f32 %v754_v10, %v754_v10 }
  0xb9   : > { %v760_v13 = vsel %vm743_vm0, %v756_v12, 0.0 }
  0xba   : > { %761 = vadd.xlane.f32.xlu1 %v760_v13 }
 0x143   : > { %v759_v14 = vpop.xlane.xlu1 %758 }
 0x144   : > { %v763_v15 = vmul.f32 0.03125, %v759_v14 }
 0x146   : > { %v765_v16 = vadd.f32 1e-12, %v763_v15 }
 0x147   : > { %v762_v17 = vpop.xlane.xlu1 %761 }
 0x148   : > { %3066 = vrsqrt.f32 %v765_v16  ;;  %v764_v18 = vmul.f32 0.03125, %v762_v17 }
 0x14a   : > { %v766_v19 = vadd.f32 1e-12, %v764_v18 }
 0x14c   : > { %3068 = vrsqrt.f32 %v766_v19 }
 0x152   : > { %v3067_v20 = vpop.eup %3066 }
 0x153   : > { %v769_v22 = vmul.f32 %v3067_v20, %v753_v6 }
 0x155   : > { %v777_v24 = vmul.f32 %v2797_v21, %v769_v22 }
 0x156   : > { %v3069_v25 = vpop.eup %3068 }
 0x157   : > { %v785_v26 = vadd.f32 %v2798_v23, %v777_v24  ;;  %v770_v27 = vmul.f32 %v3069_v25, %v754_v10 }
 0x159   : > { %787 = vst.msk [vmem:[#allocation2] sm:$0xff] %vm743_vm0, %v785_v26  ;;  %v778_v28 = vmul.f32 %v2797_v21, %v770_v27 }
 0x15b   : > { %v786_v29 = vadd.f32 %v2798_v23, %v778_v28 }
 0x15d   : > { %788 = vst.msk [vmem:[#allocation2 + $0x8] sm:$0xff] %vm743_vm0, %v786_v29 }
 0x15e PF: > { %v3070_v30 = vld [vmem:[%s3300_s22] sm:$0xff]   ;;  %v3164_v31 = vmov 0.0   ;;  %v3071_v32 = vld [vmem:[%s3300_s22 + $0x8] sm:$0xff]   ;;  %vm3165_vm1 = vmmov 0   ;;  %vm815_vm2 = vcmask 261120   ;;  %s3678_s2 = scalar_lea.vmem %s3644_s5, %s3290_s29  ;;  %s3166_s23 = smov 64  }
 0x15f   : > { %2909 = vmatprep.subr.bf16.mxu0 %v3164_v31  ;;  %2922 = vmatprep.subr.mxu1 %v3164_v31  ;;  %v2799_v36 = vld [vmem:[%s3678_s2] ss:$0 sm:$0xff]  ;;  %s3167_s24 = smov 96   ;;  %s3168_s26 = smov 88   ;;  %vm868_vm3 = vcmask 64512   ;;  %vm1200_vm4 = vcmask 130112  }
 0x160   : > { %2910 = vmatpush3.bf16.msra.mxu0 %v3070_v30  ;;  %2913 = vmatprep.mubr.msk.bf16.mxu0 %vm3165_vm1, %v3164_v31  ;;  %v3371_v33 = vld [vmem:[#allocation2] sm:$0xff]  ;;  %s3169_s1 = smov 120   ;;  %s3170_s17 = smov 80   ;;  %vm1371_vm5 = vcmask 195712   ;;  %vm1542_vm6 = vcmask 261312   ;;  %vm2459_vm7 = vcmask 523264  }
 0x161   : > { %2911 = vmatprep.subr.bf16.mxu0 %v3164_v31  ;;  %2924 = vmatprep.mubr.msk.f32.mxu1 %vm3165_vm1, %v3164_v31  ;;  %s3171_s18 = smov 112   ;;  %s3172_s19 = smov 104  }
 0x162   : > { %s3679_s21 = sld [smem:[#allocation10_spill]]  ;;  %s3173_s2 = smov 72  }
 0x163   : > { %s3178_s30 = smov 16   ;;  %s3179_s22 = smov 24  }
 0x164   : > { %v3373_v34 = vld [vmem:[#allocation2 + $0x8] sm:$0xff]  ;;  %2912 = vmatpush3.bf16.msra.mxu0 %v3071_v32  ;;  %p2847_p5 = scmp.ne.s32.totalorder %s3284_s28, 1 }
 0x165   : > { %v791_v35 = vpack.c.bf16 %v3373_v34, %v3371_v33  ;;  %2917 = vmatprep.subr.mxu0 %v3164_v31  ;;  %vm3181_vm8 = vmmov (!%p2847_p5), 0   ;;  %vm2559_vm9 = vcmask (!%p2847_p5), 1040384   ;;  %vm2628_vm10 = vcmask (!%p2847_p5), 123904  }
 0x167   : > { %2914 = vmatmul.mubr.msk.bf16.vlgmr.msra.gmra.mrb[0].mxu0 %vm815_vm2, %v791_v35 }
 0x168   : > { %2919 = vmatprep.mubr.msk.f32.mxu0 %vm3165_vm1, %v3164_v31  ;;  %v3415_v45 = vld [vmem:[%s3679_s21] ss:$0 sm:$0xff]  ;;  %v2816_v20 = vld [vmem:[%s3679_s21 + $0x1] ss:$0 sm:$0xff] }
 0x23a   : > { %v853_v37 = vpop.f32.mrb[0].mxu0 }
 0x23b   : > { %v3389_v38 = vadd.f32 %v2799_v36, %v853_v37  ;;  %v2915_v39 = vpop.f32.mrb[1].mxu0 }
 0x23c   : > { %v856_v40 = vpop.f32.mrb[2].mxu0 }
 0x23d   : > { %v3391_v41 = vadd.f32 %v2799_v36, %v856_v40  ;;  %954 = vrot.lane.b32.xlu1 %v3389_v38, %s3166_s23  ;;  %866 = vrot.lane.b32.xlu0 %v3389_v38, %s3167_s24  ;;  %v2916_v42 = vpop.f32.mrb[3].mxu0 }
 0x241   : > { %1033 = vrot.lane.b32.xlu1 %v3389_v38, %s3168_s26 }
 0x245   : > { %1031 = vrot.lane.b32.xlu1 %v3389_v38, %s3169_s1 }
 0x249   : > { %1204 = vrot.lane.b32.xlu1 %v3389_v38, %s3170_s17 }
 0x24d   : > { %1202 = vrot.lane.b32.xlu1 %v3389_v38, %s3171_s18 }
 0x251   : > { %1373 = vrot.lane.b32.xlu1 %v3389_v38, %s3172_s19 }
 0x2af   : > { %v955_v43 = vpop.permute.xlu1 %954  ;;  %v867_v44 = vpop.permute.xlu0 %866 }
 0x2b0   : > { %2918 = vmatpush3.xpose.msk.msra.mxu0 %vm868_vm3, %v867_v44  ;;  %2923 = vmatpush3.msra.mxu1 %v955_v43 }
 0x2b1   : > { %2927 = vmatprep.subr.mxu1 %v3164_v31  ;;  %2932 = vmatprep.subr.mxu0 %v3164_v31 }
 0x2b3   : > { %2920 = vmatmul.mubr.msk.f32.vlgmr.msra.gmra.mrb[4].mxu0 %vm868_vm3, %v3389_v38  ;;  %v1034_v55 = vpop.permute.xlu1 %1033 }
 0x2b4   : > { %2934 = vmatprep.mubr.msk.f32.mxu0 %vm3165_vm1, %v3164_v31 }
 0x2b7   : > { %v1032_v56 = vpop.permute.xlu1 %1031 }
 0x2bb   : > { %v1205_v57 = vpop.permute.xlu1 %1204 }
 0x2bf   : > { %v1203_v58 = vpop.permute.xlu1 %1202 }
 0x2c3   : > { %v1374_v59 = vpop.permute.xlu1 %1373 }
 0x386   : > { %v939_v46 = vpop.f32.mrb[4].mxu0 }
 0x387   : > { %v940_v47 = vadd.f32 %v3415_v45, %v939_v46  ;;  %v2921_v48 = vpop.f32.mrb[5].mxu0 }
 0x389   : > { %v943_v49 = vsel %vm868_vm3, %v940_v47, -inf }
 0x38a   : > { %944 = vmax.xlane.f32.xlu0 %v943_v49 }
 0x3a0   : > { %1375 = vrot.lane.b32.xlu0 %v3389_v38, %s3173_s2 }
 0x3a4   : > { %1884 = vrot.lane.b32.xlu0 %v3391_v41, %s3171_s18  ;;  %s3176_s18 = smov 56  }
 0x3a8   : > { %2054 = vrot.lane.b32.xlu0 %v3391_v41, %s3172_s19  ;;  %s3177_s19 = smov 8  }
 0x417   : > { %v945_v50 = vpop.xlane.xlu0 %944 }
 0x418   : > { %v946_v51 = vsub.f32 %v940_v47, %v945_v50 }
 0x41a   : > { %v947_v52 = vmul.f32 1.442695, %v946_v51 }
 0x41b   : > { %v1376_v1 = vpop.permute.xlu0 %1375 }
 0x41c   : > { %3080 = vpow2.f32 %v947_v52 }
 0x41f   : > { %v1885_v4 = vpop.permute.xlu0 %1884 }
 0x423   : > { %v2055_v6 = vpop.permute.xlu0 %2054 }
 0x426   : > { %v3081_v53 = vpop.eup %3080 }
 0x427   : > { %v949_v54 = vsel %vm868_vm3, %v3081_v53, 0.0 }
 0x428   : > { %950 = vadd.xlane.f32.xlu1 %v949_v54 }
 0x439   : > { %1550 = vrot.lane.b32.xlu1 %v3391_v41, %s3167_s24 }
 0x43d   : > { %1716 = vrot.lane.b32.xlu1 %v3391_v41, %s3168_s26  ;;  %s3681_s26 = scalar_lea.vmem %s3646_s7, %s3290_s29 }
 0x441   : > { %1714 = vrot.lane.b32.xlu1 %v3391_v41, %s3169_s1  ;;  %s3174_s1 = smov 48  }
 0x445   : > { %1886 = vrot.lane.b32.xlu1 %v3391_v41, %s3170_s17  ;;  %s3175_s17 = smov 40  }
 0x449   : > { %2056 = vrot.lane.b32.xlu1 %v3391_v41, %s3173_s2 }
 0x4b5   : > { %v951_v60 = vpop.xlane.xlu1 %950 }
 0x4b6   : > { %3082 = vrcp.f32 %v951_v60 }
 0x4b9   : > { %v1551_v63 = vpop.permute.xlu1 %1550 }
 0x4bd   : > { %v1717_v0 = vpop.permute.xlu1 %1716 }
 0x4c0   : > { %v3083_v61 = vpop.eup %3082 }
 0x4c1   : > { %v953_v62 = vmul.f32 %v3083_v61, %v3081_v53  ;;  %v1715_v2 = vpop.permute.xlu1 %1714 }
 0x4c3   : > { %2925 = vmatmul.mubr.msk.f32.vlgmr.msra.gmra.mrb[0].mxu1 %vm868_vm3, %v953_v62 }
 0x4c4   : > { %2928 = vmatpush3.xpose.msk.msra.mxu1 %vm868_vm3, %v1034_v55  ;;  %2929 = vmatprep.mubr.msk.f32.mxu1 %vm3165_vm1, %v3164_v31 }
 0x4c5   : > { %2937 = vmatprep.subr.mxu1 %v3164_v31  ;;  %v1887_v3 = vpop.permute.xlu1 %1886 }
 0x4c7   : > { %2930 = vmatmul.mubr.msk.f32.vlgmr.msra.gmra.mrb[2].mxu1 %vm868_vm3, %v1032_v56 }
 0x4c8   : > { %2938 = vmatpush3.xpose.msk.msra.mxu1 %vm868_vm3, %v1205_v57  ;;  %2939 = vmatprep.mubr.msk.f32.mxu1 %vm3165_vm1, %v3164_v31 }
 0x4c9   : > { %2947 = vmatprep.subr.mxu1 %v3164_v31  ;;  %v2057_v5 = vpop.permute.xlu1 %2056 }
 0x4cb   : > { %2940 = vmatmul.mubr.msk.f32.vlgmr.msra.gmra.mrb[4].mxu1 %vm868_vm3, %v1203_v58 }
 0x4cc   : > { %2948 = vmatpush3.xpose.msk.msra.mxu1 %vm868_vm3, %v1376_v1  ;;  %2949 = vmatprep.mubr.msk.f32.mxu1 %vm3165_vm1, %v3164_v31 }
 0x4cd   : > { %2957 = vmatprep.subr.mxu1 %v3164_v31 }
 0x4cf   : > { %2950 = vmatmul.mubr.msk.f32.vlgmr.msra.gmra.mrb[6].mxu1 %vm868_vm3, %v1374_v59 }
 0x4d0   : > { %2958 = vmatpush3.xpose.msk.msra.mxu1 %vm868_vm3, %v1551_v63  ;;  %2959 = vmatprep.mubr.msk.f32.mxu1 %vm3165_vm1, %v3164_v31 }
 0x4d1   : > { %2967 = vmatprep.subr.mxu1 %v3164_v31 }
 0x4d3   : > { %2960 = vmatmul.mubr.msk.f32.vlgmr.msra.gmra.mrb[8].mxu1 %vm868_vm3, %v3391_v41 }
 0x4d4   : > { %2968 = vmatpush3.xpose.msk.msra.mxu1 %vm868_vm3, %v1717_v0  ;;  %2969 = vmatprep.mubr.msk.f32.mxu1 %vm3165_vm1, %v3164_v31 }
 0x4d5   : > { %2977 = vmatprep.subr.mxu1 %v3164_v31 }
 0x4d7   : > { %2970 = vmatmul.mubr.msk.f32.vlgmr.msra.gmra.mrb[10].mxu1 %vm868_vm3, %v1715_v2 }
 0x4d8   : > { %2978 = vmatpush3.xpose.msk.msra.mxu1 %vm868_vm3, %v1887_v3  ;;  %2979 = vmatprep.mubr.msk.f32.mxu1 %vm3165_vm1, %v3164_v31 }
 0x4d9   : > { %2987 = vmatprep.subr.mxu1 %v3164_v31 }
 0x4db   : > { %2980 = vmatmul.mubr.msk.f32.vlgmr.msra.gmra.mrb[12].mxu1 %vm868_vm3, %v1885_v4 }
 0x4dc   : > { %2988 = vmatpush3.xpose.msk.msra.mxu1 %vm868_vm3, %v2057_v5  ;;  %2989 = vmatprep.mubr.msk.f32.mxu1 %vm3165_vm1, %v3164_v31 }
 0x4dd   : > { %2997 = vmatprep.subr.bf16.mxu1 %v3164_v31 }
 0x4df   : > { %2990 = vmatmul.mubr.msk.f32.vlgmr.msra.gmra.mrb[14].mxu1 %vm868_vm3, %v2055_v6 }
 0x4e0   : > { %3001 = vmatprep.mubr.msk.bf16.mxu1 %vm3165_vm1, %v3164_v31 }
 0x596   : > { %v1026_v7 = vpop.f32.mrb[0].mxu1 }
 0x597   : > { %1030 = vst.msk [vmem:[#allocation3] sm:$0xff] %vm868_vm3, %v1026_v7  ;;  %v2926_v8 = vpop.f32.mrb[1].mxu1 }
 0x59a   : > { %v1105_v9 = vpop.f32.mrb[2].mxu1 }
 0x59b   : > { %v1106_v10 = vadd.f32 %v3415_v45, %v1105_v9  ;;  %v2931_v11 = vpop.f32.mrb[3].mxu1 }
 0x59d   : > { %v1109_v12 = vsel %vm868_vm3, %v1106_v10, -inf }
 0x59e   : > { %1110 = vmax.xlane.f32.xlu1 %v1109_v12  ;;  %v1276_v13 = vpop.f32.mrb[4].mxu1 }
 0x59f   : > { %v1277_v14 = vadd.f32 %v3415_v45, %v1276_v13  ;;  %v2941_v15 = vpop.f32.mrb[5].mxu1 }
 0x5a1   : > { %v1280_v16 = vsel %vm868_vm3, %v1277_v14, -inf }
 0x5a2   : > { %1281 = vmax.xlane.f32.xlu0 %v1280_v16  ;;  %v1447_v17 = vpop.f32.mrb[6].mxu1 }
 0x5a3   : > { %v1448_v18 = vadd.f32 %v3415_v45, %v1447_v17  ;;  %v2951_v19 = vpop.f32.mrb[7].mxu1 }
 0x5a5   : > { %v1451_v21 = vsel %vm868_vm3, %v1448_v18, -inf }
 0x5a6   : > { %1452 = vmax.xlane.f32.xlu0 %v1451_v21  ;;  %v1622_v22 = vpop.f32.mrb[8].mxu1 }
 0x5a7   : > { %v1623_v23 = vadd.f32 %v2816_v20, %v1622_v22  ;;  %v2961_v24 = vpop.f32.mrb[9].mxu1 }
 0x5a9   : > { %v1626_v25 = vsel %vm868_vm3, %v1623_v23, -inf }
 0x5aa   : > { %1627 = vmax.xlane.f32.xlu1 %v1626_v25  ;;  %v1788_v26 = vpop.f32.mrb[10].mxu1 }
 0x5ab   : > { %v1789_v27 = vadd.f32 %v2816_v20, %v1788_v26  ;;  %v2971_v28 = vpop.f32.mrb[11].mxu1 }
 0x5ad   : > { %v1792_v29 = vsel %vm868_vm3, %v1789_v27, -inf }
 0x5ae   : > { %1793 = vmax.xlane.f32.xlu0 %v1792_v29  ;;  %v1958_v30 = vpop.f32.mrb[12].mxu1 }
 0x5af   : > { %v1959_v32 = vadd.f32 %v2816_v20, %v1958_v30  ;;  %v2981_v35 = vpop.f32.mrb[13].mxu1 }
 0x5b1   : > { %v1962_v36 = vsel %vm868_vm3, %v1959_v32, -inf }
 0x5b2   : > { %1963 = vmax.xlane.f32.xlu1 %v1962_v36  ;;  %v2128_v37 = vpop.f32.mrb[14].mxu1 }
 0x5b3   : > { %v2129_v39 = vadd.f32 %v2816_v20, %v2128_v37  ;;  %v2991_v40 = vpop.f32.mrb[15].mxu1 }
 0x5b5   : > { %v2132_v42 = vsel %vm868_vm3, %v2129_v39, -inf }
 0x5b6   : > { %2133 = vmax.xlane.f32.xlu0 %v2132_v42 }
 0x5c3   : > { %1291 = vrot.lane.b32.xlu1 %v3389_v38, %s3174_s1 }
 0x5c7   : > { %1462 = vrot.lane.b32.xlu1 %v3389_v38, %s3175_s17 }
 0x5cc   : > { %1120 = vrot.lane.b32.xlu0 %v3389_v38, %s3176_s18 }
 0x62b   : > { %v1111_v43 = vpop.xlane.xlu1 %1110 }
 0x62c   : > { %v1112_v44 = vsub.f32 %v1106_v10, %v1111_v43 }
 0x62e   : > { %v1113_v45 = vmul.f32 1.442695, %v1112_v44 }
 0x62f   : > { %v1282_v46 = vpop.xlane.xlu0 %1281 }
 0x630   : > { %3084 = vpow2.f32 %v1113_v45  ;;  %v1283_v47 = vsub.f32 %v1277_v14, %v1282_v46 }
 0x632   : > { %v1284_v48 = vmul.f32 1.442695, %v1283_v47 }
 0x633   : > { %v1453_v50 = vpop.xlane.xlu0 %1452 }
 0x634   : > { %3086 = vpow2.f32 %v1284_v48  ;;  %v1454_v56 = vsub.f32 %v1448_v18, %v1453_v50 }
 0x636   : > { %v1455_v59 = vmul.f32 1.442695, %v1454_v56 }
 0x637   : > { %v1628_v57 = vpop.xlane.xlu1 %1627 }
 0x638   : > { %v1629_v58 = vsub.f32 %v1623_v23, %v1628_v57  ;;  %3088 = vpow2.f32 %v1455_v59 }
 0x63a   : > { %v3085_v49 = vpop.eup %3084  ;;  %v1630_v62 = vmul.f32 1.442695, %v1629_v58 }
 0x63b   : > { %v1115_v51 = vsel %vm868_vm3, %v3085_v49, 0.0  ;;  %v1794_v53 = vpop.xlane.xlu0 %1793 }
 0x63c   : > { %1116 = vadd.xlane.f32.xlu1 %v1115_v51  ;;  %v1795_v60 = vsub.f32 %v1789_v27, %v1794_v53  ;;  %3090 = vpow2.f32 %v1630_v62 }
 0x63e   : > { %v3087_v52 = vpop.eup %3086  ;;  %v1796_v0 = vmul.f32 1.442695, %v1795_v60 }
 0x63f   : > { %v1286_v54 = vsel %vm868_vm3, %v3087_v52, 0.0  ;;  %v1964_v61 = vpop.xlane.xlu1 %1963 }
 0x640   : > { %1287 = vadd.xlane.f32.xlu0 %v1286_v54  ;;  %v1965_v63 = vsub.f32 %v1959_v32, %v1964_v61  ;;  %3092 = vpow2.f32 %v1796_v0 }
 0x642   : > { %v1966_v2 = vmul.f32 1.442695, %v1965_v63  ;;  %v3089_v4 = vpop.eup %3088 }
 0x643   : > { %v2134_v55 = vpop.xlane.xlu0 %2133  ;;  %v1457_v6 = vsel %vm868_vm3, %v3089_v4, 0.0  ;;  %v1292_v14 = vpop.permute.xlu1 %1291 }
 0x644   : > { %v2135_v1 = vsub.f32 %v2129_v39, %v2134_v55  ;;  %3094 = vpow2.f32 %v1966_v2 }
 0x646   : > { %v2136_v3 = vmul.f32 1.442695, %v2135_v1  ;;  %v3091_v5 = vpop.eup %3090 }
 0x647   : > { %v1121_v38 = vpop.permute.xlu0 %1120  ;;  %v1632_v9 = vsel %vm868_vm3, %v3091_v5, 0.0  ;;  %v1463_v15 = vpop.permute.xlu1 %1462 }
 0x648   : > { %2933 = vmatpush3.msra.mxu0 %v1121_v38  ;;  %3096 = vpow2.f32 %v2136_v3 }
 0x649   : > { %2942 = vmatprep.subr.mxu0 %v3164_v31 }
 0x64a   : > { %v3093_v7 = vpop.eup %3092 }
 0x64b   : > { %v1798_v10 = vsel %vm868_vm3, %v3093_v7, 0.0 }
 0x64d   : > { %1803 = vrot.lane.b32.xlu1 %v3391_v41, %s3176_s18 }
 0x64e   : > { %v3095_v8 = vpop.eup %3094 }
 0x64f   : > { %v1968_v12 = vsel %vm868_vm3, %v3095_v8, 0.0 }
 0x652   : > { %v3499_v11 = vpop.eup %3096 }
 0x653   : > { %v2138_v13 = vsel %vm868_vm3, %v3499_v11, 0.0 }
 0x656   : > { %1637 = vrot.lane.b32.xlu0 %v3391_v41, %s3166_s23  ;;  %s3680_s23 = sld [smem:[#allocation8_spill]] }
 0x65c   : > { %v3073_v54 = vld [vmem:[%s3680_s23 + $0x8] sm:$0xff]  }
 0x671   : > { %1458 = vadd.xlane.f32.xlu1 %v1457_v6 }
 0x675   : > { %1633 = vadd.xlane.f32.xlu0 %v1632_v9  ;;  %1799 = vadd.xlane.f32.xlu1 %v1798_v10 }
 0x679   : > { %1969 = vadd.xlane.f32.xlu0 %v1968_v12  ;;  %2139 = vadd.xlane.f32.xlu1 %v2138_v13 }
 0x68a   : > { %2143 = vrot.lane.b32.xlu1 %v3391_v41, %s3175_s17  ;;  %s3684_s17 = sld [smem:[#allocation14_spill]] (!%p2847_p5) }
 0x68f   : > { %1973 = vrot.lane.b32.xlu0 %v3391_v41, %s3174_s1 }
 0x6c9   : > { %v1117_v16 = vpop.xlane.xlu1 %1116 }
 0x6ca   : > { %3098 = vrcp.f32 %v1117_v16 }
 0x6cd   : > { %v1288_v17 = vpop.xlane.xlu0 %1287  ;;  %v1804_v41 = vpop.permute.xlu1 %1803 }
 0x6ce   : > { %3100 = vrcp.f32 %v1288_v17 }
 0x6d1   : > { %v1638_v22 = vpop.permute.xlu0 %1637 }
 0x6d4   : > { %v3099_v18 = vpop.eup %3098 }
 0x6d5   : > { %v1119_v19 = vmul.f32 %v3099_v18, %v3085_v49 }
 0x6d7   : > { %2935 = vmatmul.mubr.msk.f32.vlgmr.msra.gmra.mrb[6].mxu0 %vm868_vm3, %v1119_v19 }
 0x6d8   : > { %v3101_v20 = vpop.eup %3100  ;;  %2943 = vmatpush3.msra.mxu0 %v1292_v14  ;;  %2944 = vmatprep.mubr.msk.f32.mxu0 %vm3165_vm1, %v3164_v31 }
 0x6d9   : > { %v1290_v21 = vmul.f32 %v3101_v20, %v3087_v52  ;;  %2952 = vmatprep.subr.mxu0 %v3164_v31  ;;  %v3072_v52 = vld [vmem:[%s3680_s23] sm:$0xff]   ;;  %s3685_s23 = sld [smem:[#allocation15_spill]] (!%p2847_p5) }
 0x6da   : > { %2998 = vmatpush3.bf16.msra.mxu1 %v3072_v52 }
 0x6db   : > { %2945 = vmatmul.mubr.msk.f32.vlgmr.msra.gmra.mrb[8].mxu0 %vm868_vm3, %v1290_v21  ;;  %2999 = vmatprep.subr.bf16.mxu1 %v3164_v31 }
 0x6dc   : > { %2953 = vmatpush3.msra.mxu0 %v1463_v15  ;;  %2954 = vmatprep.mubr.msk.f32.mxu0 %vm3165_vm1, %v3164_v31 }
 0x6dd   : > { %2962 = vmatprep.subr.mxu0 %v3164_v31 }
 0x6de   : > { %3000 = vmatpush3.bf16.msra.mxu1 %v3073_v54 }
 0x6df   : > { %3013 = vmatprep.subr.bf16.mxu1 %v3164_v31 }
 0x6fe   : > { %v1459_v23 = vpop.xlane.xlu1 %1458 }
 0x6ff   : > { %3102 = vrcp.f32 %v1459_v23 }
 0x702   : > { %v1634_v24 = vpop.xlane.xlu0 %1633  ;;  %v1800_v25 = vpop.xlane.xlu1 %1799 }
 0x703   : > { %3104 = vrcp.f32 %v1634_v24  ;;  %v3075_v24 = vld [vmem:[%s3322_s4 + $0x8] sm:$0xff]  }
 0x704   : > { %3106 = vrcp.f32 %v1800_v25 }
 0x706   : > { %v1970_v26 = vpop.xlane.xlu0 %1969  ;;  %v2140_v29 = vpop.xlane.xlu1 %2139 }
 0x707   : > { %3108 = vrcp.f32 %v1970_v26 }
 0x708   : > { %3110 = vrcp.f32 %v2140_v29 }
 0x709   : > { %v3103_v27 = vpop.eup %3102 }
 0x70a   : > { %v1461_v28 = vmul.f32 %v3103_v27, %v3089_v4  ;;  %v1974_v39 = vpop.permute.xlu0 %1973  ;;  %v2144_v43 = vpop.permute.xlu1 %2143 }
 0x70c   : > { %2955 = vmatmul.mubr.msk.f32.vlgmr.msra.gmra.mrb[10].mxu0 %vm868_vm3, %v1461_v28 }
 0x70d   : > { %2963 = vmatpush3.msra.mxu0 %v1638_v22  ;;  %2964 = vmatprep.mubr.msk.f32.mxu0 %vm3165_vm1, %v3164_v31  ;;  %v3105_v30 = vpop.eup %3104 }
 0x70e   : > { %2972 = vmatprep.subr.mxu0 %v3164_v31  ;;  %v1636_v32 = vmul.f32 %v3105_v30, %v3091_v5  ;;  %v3107_v35 = vpop.eup %3106  ;;  %v2829_v5 = vld [vmem:[%s3681_s26] ss:$0 sm:$0xff] }
 0x70f   : > { %v1802_v36 = vmul.f32 %v3107_v35, %v3093_v7 }
 0x710   : > { %2965 = vmatmul.mubr.msk.f32.vlgmr.msra.gmra.mrb[12].mxu0 %vm868_vm3, %v1636_v32 }
 0x711   : > { %2973 = vmatpush3.msra.mxu0 %v1804_v41  ;;  %2974 = vmatprep.mubr.msk.f32.mxu0 %vm3165_vm1, %v3164_v31  ;;  %v3109_v37 = vpop.eup %3108 }
 0x712   : > { %2982 = vmatprep.subr.mxu0 %v3164_v31  ;;  %v1972_v40 = vmul.f32 %v3109_v37, %v3095_v8  ;;  %v3111_v42 = vpop.eup %3110 }
 0x713   : > { %v2142_v44 = vmul.f32 %v3111_v42, %v3499_v11 }
 0x714   : > { %2975 = vmatmul.mubr.msk.f32.vlgmr.msra.gmra.mrb[14].mxu0 %vm868_vm3, %v1802_v36 }
 0x715   : > { %2983 = vmatpush3.msra.mxu0 %v1974_v39  ;;  %2984 = vmatprep.mubr.msk.f32.mxu0 %vm3165_vm1, %v3164_v31 }
 0x716   : > { %2992 = vmatprep.subr.mxu0 %v3164_v31 }
 0x718   : > { %2985 = vmatmul.mubr.msk.f32.vlgmr.msra.gmra.mrb[16].mxu0 %vm868_vm3, %v1972_v40 }
 0x719   : > { %2993 = vmatpush3.msra.mxu0 %v2144_v43  ;;  %2994 = vmatprep.mubr.msk.f32.mxu0 %vm3165_vm1, %v3164_v31 }
 0x71a   : > { %3005 = vmatprep.subr.bf16.mxu0 %v3164_v31 }
 0x71c   : > { %2995 = vmatmul.mubr.msk.f32.vlgmr.msra.gmra.mrb[18].mxu0 %vm868_vm3, %v2142_v44 }
 0x71d   : > { %3009 = vmatprep.mubr.msk.bf16.mxu0 %vm3165_vm1, %v3164_v31 }
 0x7aa   : > { %v1192_v45 = vpop.f32.mrb[6].mxu0 }
 0x7ab   : > { %1197 = vrot.lane.b32.xlu0 %v1192_v45, %s3177_s19  ;;  %v2936_v46 = vpop.f32.mrb[7].mxu0 }
 0x7ae   : > { %v1363_v47 = vpop.f32.mrb[8].mxu0 }
 0x7af   : > { %1368 = vrot.lane.b32.xlu0 %v1363_v47, %s3178_s30  ;;  %v2946_v48 = vpop.f32.mrb[9].mxu0  ;;  %v3076_v47 = vld [vmem:[%s3332_s27] sm:$0xff]  }
 0x7b0   : > { %v3077_v48 = vld [vmem:[%s3332_s27 + $0x8] sm:$0xff]  }
 0x7df   : > { %v1534_v49 = vpop.f32.mrb[10].mxu0 }
 0x7e0   : > { %1539 = vrot.lane.b32.xlu0 %v1534_v49, %s3179_s22  ;;  %v2956_v50 = vpop.f32.mrb[11].mxu0  ;;  %v3078_v49 = vld [vmem:[%s3332_s27 + $0x10] sm:$0xff]  }
 0x7e1   : > { %v3079_v50 = vld [vmem:[%s3332_s27 + $0x18] sm:$0xff]  }
 0x7e3   : > { %v1709_v51 = vpop.f32.mrb[12].mxu0 }
 0x7e4   : > { %1713 = vst.msk [vmem:[#allocation3 + $0x8] sm:$0xff] %vm868_vm3, %v1709_v51  ;;  %v2966_v53 = vpop.f32.mrb[13].mxu0  ;;  %v2835_v51 = vld [vmem:[%s719_s6] ss:$0 sm:$0xff] }
 0x7e7   : > { %v1875_v55 = vpop.f32.mrb[14].mxu0 }
 0x7e8   : > { %1880 = vrot.lane.b32.xlu1 %v1875_v55, %s3177_s19  ;;  %v2976_v38 = vpop.f32.mrb[15].mxu0  ;;  %s3683_s19 = scalar_lea.vmem %s3648_s9, %s3290_s29 }
 0x7e9   : > { %v2834_v42 = vld [vmem:[%s3683_s19] ss:$0 sm:$0xff] }
 0x7eb   : > { %v2045_v56 = vpop.f32.mrb[16].mxu0 }
 0x7ec   : > { %2050 = vrot.lane.b32.xlu1 %v2045_v56, %s3178_s30  ;;  %v2986_v57 = vpop.f32.mrb[17].mxu0 }
 0x7ef   : > { %v2215_v58 = vpop.f32.mrb[18].mxu0 }
 0x7f0   : > { %2220 = vrot.lane.b32.xlu1 %v2215_v58, %s3179_s22  ;;  %v2996_v59 = vpop.f32.mrb[19].mxu0 }
 0x81d   : > { %v1198_v60 = vpop.permute.xlu0 %1197 }
 0x81e   : > { %1201 = vst.msk [vmem:[#allocation3] sm:$0xff] %vm1200_vm4, %v1198_v60 }
 0x821   : > { %v1369_v61 = vpop.permute.xlu0 %1368 }
 0x822   : > { %1372 = vst.msk [vmem:[#allocation3] sm:$0xff] %vm1371_vm5, %v1369_v61 }
 0x852   : > { %v1540_v62 = vpop.permute.xlu0 %1539 }
 0x853   : > { %1543 = vst.msk [vmem:[#allocation3] sm:$0xff] %vm1542_vm6, %v1540_v62 }
 0x85a   : > { %v1881_v63 = vpop.permute.xlu1 %1880  ;;  %v2224_v2 = vld [vmem:[#allocation3] sm:$0xff] }
 0x85b   : > { %1883 = vst.msk [vmem:[#allocation3 + $0x8] sm:$0xff] %vm1200_vm4, %v1881_v63 }
 0x85e   : > { %v2051_v0 = vpop.permute.xlu1 %2050 }
 0x85f   : > { %2053 = vst.msk [vmem:[#allocation3 + $0x8] sm:$0xff] %vm1371_vm5, %v2051_v0 }
 0x862   : > { %v2221_v1 = vpop.permute.xlu1 %2220 }
 0x863   : > { %2223 = vst.msk [vmem:[#allocation3 + $0x8] sm:$0xff] %vm1542_vm6, %v2221_v1 }
 0x86a   : > { %v2225_v3 = vld [vmem:[#allocation3 + $0x8] sm:$0xff] }
 0x86b   : > { %v2226_v4 = vpack.c.bf16 %v2225_v3, %v2224_v2  ;;  %v2839_v3 = vld [vmem:[%s727_s0] ss:$0 sm:$0xff] }
 0x86d   : > { %3002 = vmatmul.mubr.msk.bf16.vlgmr.msra.gmra.mrb[16].mxu1 %vm815_vm2, %v2226_v4 }
 0x86e   : > { %3021 = vmatprep.mubr.msk.bf16.mxu1 %vm3165_vm1, %v3164_v31  ;;  %3014 = vmatpush3.bf16.msra.mxu1 %v3076_v47 }
 0x86f   : > { %3015 = vmatprep.subr.bf16.mxu1 %v3164_v31 }
 0x872   : > { %3016 = vmatpush3.bf16.msra.mxu1 %v3077_v48  ;;  %v2848_v48 = vld [vmem:[%s3685_s23] ss:$0 sm:$0xff] (!%p2847_p5) }
 0x873   : > { %3017 = vmatprep.subr.bf16.mxu1 %v3164_v31 }
 0x876   : > { %3018 = vmatpush3.bf16.msra.mxu1 %v3078_v49 }
 0x877   : > { %3019 = vmatprep.subr.bf16.mxu1 %v3164_v31 }
 0x87a   : > { %3020 = vmatpush3.bf16.msra.mxu1 %v3079_v50 }
 0x940   : > { %v2287_v6 = vpop.f32.mrb[16].mxu1 }
 0x941   : > { %v2288_v7 = vadd.f32 %v2829_v5, %v2287_v6  ;;  %v3003_v8 = vpop.f32.mrb[17].mxu1 }
 0x942   : > { %v2290_v9 = vpop.f32.mrb[18].mxu1 }
 0x943   : > { %v2291_v10 = vadd.f32 %v2829_v5, %v2290_v9  ;;  %v3004_v11 = vpop.f32.mrb[19].mxu1  ;;  %v2294_v12 = vadd.f32 %v2288_v7, %v3371_v33 }
 0x945   : > { %v2298_v13 = vsel %vm815_vm2, %v2294_v12, 0.0  ;;  %v2295_v14 = vadd.f32 %v2291_v10, %v3373_v34  ;;  %v3074_v34 = vld [vmem:[%s3322_s4] sm:$0xff]   ;;  %s3682_s4 = scalar_lea.vmem %s3647_s8, %s3290_s29 }
 0x946   : > { %2299 = vadd.xlane.f32.xlu0 %v2298_v13  ;;  %3006 = vmatpush3.bf16.msra.mxu0 %v3074_v34  ;;  %v2833_v36 = vld [vmem:[%s3682_s4] ss:$0 sm:$0xff] }
 0x947   : > { %v2301_v15 = vsel %vm815_vm2, %v2295_v14, 0.0  ;;  %3007 = vmatprep.subr.bf16.mxu0 %v3164_v31 }
 0x948   : > { %2302 = vadd.xlane.f32.xlu1 %v2301_v15 }
 0x94a   : > { %3008 = vmatpush3.bf16.msra.mxu0 %v3075_v24 }
 0x9d3   : > { %v2300_v16 = vpop.xlane.xlu0 %2299 }
 0x9d4   : > { %v2305_v17 = vmul.f32 0.03125, %v2300_v16 }
 0x9d5   : > { %v2303_v18 = vpop.xlane.xlu1 %2302 }
 0x9d6   : > { %v2307_v19 = vsub.f32 %v2294_v12, %v2305_v17  ;;  %v2306_v20 = vmul.f32 0.03125, %v2303_v18 }
 0x9d8   : > { %v2308_v21 = vsub.f32 %v2295_v14, %v2306_v20  ;;  %v2309_v41 = vmul.f32 %v2307_v19, %v2307_v19 }
 0x9da   : > { %v2311_v22 = vsel %vm815_vm2, %v2309_v41, 0.0  ;;  %v2310_v33 = vmul.f32 %v2308_v21, %v2308_v21 }
 0x9db   : > { %2312 = vadd.xlane.f32.xlu0 %v2311_v22 }
 0x9dc   : > { %v2314_v23 = vsel %vm815_vm2, %v2310_v33, 0.0 }
 0x9df   : > { %2315 = vadd.xlane.f32.xlu0 %v2314_v23 }
 0xa68   : > { %v2313_v25 = vpop.xlane.xlu0 %2312 }
 0xa69   : > { %v2317_v26 = vmul.f32 0.03125, %v2313_v25 }
 0xa6b   : > { %v2319_v27 = vadd.f32 1e-12, %v2317_v26 }
 0xa6c   : > { %v2316_v28 = vpop.xlane.xlu0 %2315 }
 0xa6d   : > { %3112 = vrsqrt.f32 %v2319_v27  ;;  %v2318_v29 = vmul.f32 0.03125, %v2316_v28  ;;  %v2845_v28 = vld [vmem:[%s730_s20] ss:$0 sm:$0xff] }
 0xa6f   : > { %v2320_v30 = vadd.f32 1e-12, %v2318_v29 }
 0xa71   : > { %3114 = vrsqrt.f32 %v2320_v30 }
 0xa77   : > { %v3113_v32 = vpop.eup %3112 }
 0xa78   : > { %v2323_v35 = vmul.f32 %v3113_v32, %v2307_v19  ;;  %v2846_v32 = vld [vmem:[%s733_s16] ss:$0 sm:$0xff] }
 0xa7a   : > { %v2331_v39 = vmul.f32 %v2833_v36, %v2323_v35 }
 0xa7b   : > { %v3115_v37 = vpop.eup %3114 }
 0xa7c   : > { %v2324_v40 = vmul.f32 %v3115_v37, %v2308_v21  ;;  %v2339_v44 = vadd.f32 %v2834_v42, %v2331_v39 }
 0xa7e   : > { %v2332_v43 = vmul.f32 %v2833_v36, %v2324_v40 }
 0xa80   : > { %v2340_v45 = vadd.f32 %v2834_v42, %v2332_v43  ;;  %v3124_v42 = vld [vmem:[%s3684_s17] sm:$0xff] (!%p2847_p5)   ;;  %v3180_v43 = vmov (!%p2847_p5), 0.0  }
 0xa81   : > { %3025 = vmatprep.subr.bf16.mxu0 (!%p2847_p5), %v3180_v43 }
 0xa82   : > { %v2341_v46 = vpack.c.bf16 %v2340_v45, %v2339_v44 }
 0xa84   : > { %3010 = vmatmul.mubr.msk.bf16.vlgmr.msra.gmra.mrb[20].mxu0 %vm815_vm2, %v2341_v46 }
 0xa85   : > { %3026 = vmatpush3.bf16.msra.mxu0 (!%p2847_p5), %v3124_v42  ;;  %3029 = vmatprep.mubr.msk.bf16.mxu0 (!%p2847_p5), %vm3181_vm8, %v3180_v43 }
 0xa86   : > { %3027 = vmatprep.subr.bf16.mxu0 (!%p2847_p5), %v3180_v43 }
 0xb57   : > { %v2402_v52 = vpop.f32.mrb[20].mxu0 }
 0xb58   : > { %v2403_v53 = vadd.f32 %v2835_v51, %v2402_v52  ;;  %v3011_v54 = vpop.f32.mrb[21].mxu0 }
 0xb59   : > { %v2405_v55 = vpop.f32.mrb[22].mxu0 }
 0xb5a   : > { %v2411_v38 = vmul.f32 0.70710677, %v2403_v53  ;;  %v2406_v56 = vadd.f32 %v2835_v51, %v2405_v55  ;;  %v3012_v57 = vpop.f32.mrb[23].mxu0  ;;  %v2409_v61 = vmul.f32 0.5, %v2403_v53 }
 0xb5c   : > { %3116 = verf.f32 %v2411_v38  ;;  %v2412_v58 = vmul.f32 0.70710677, %v2406_v56  ;;  %v2410_v62 = vmul.f32 0.5, %v2406_v56 }
 0xb5e   : > { %3118 = verf.f32 %v2412_v58 }
 0xb66   : > { %v3117_v59 = vpop.eup %3116 }
 0xb67   : > { %v2415_v31 = vadd.f32 1.0, %v3117_v59 }
 0xb68   : > { %v3119_v60 = vpop.eup %3118 }
 0xb69   : > { %v2416_v63 = vadd.f32 1.0, %v3119_v60  ;;  %v2417_v0 = vmul.f32 %v2415_v31, %v2409_v61 }
 0xb6b   : > { %v2418_v1 = vmul.f32 %v2416_v63, %v2410_v62 }
 0xb6d   : > { %v2419_v2 = vpack.c.bf16 %v2418_v1, %v2417_v0 }
 0xb6f   : > { %3022 = vmatmul.mubr.msk.bf16.vlgmr.msra.gmra.mrb[20].mxu1 %vm2459_vm7, %v2419_v2 }
 0xc42   : > { %v2497_v4 = vpop.f32.mrb[20].mxu1 }
 0xc43   : > { %v2498_v5 = vadd.f32 %v2839_v3, %v2497_v4  ;;  %v3023_v6 = vpop.f32.mrb[21].mxu1 }
 0xc44   : > { %v2500_v7 = vpop.f32.mrb[22].mxu1 }
 0xc45   : > { %v2501_v8 = vadd.f32 %v2839_v3, %v2500_v7  ;;  %v3024_v9 = vpop.f32.mrb[23].mxu1  ;;  %v2504_v10 = vadd.f32 %v2498_v5, %v2339_v44  ;;  %v3125_v44 = vld [vmem:[%s3684_s17 + $0x8] sm:$0xff] (!%p2847_p5)  }
 0xc46   : > { %3028 = vmatpush3.bf16.msra.mxu0 (!%p2847_p5), %v3125_v44 }
 0xc47   : > { %v2508_v11 = vsel %vm815_vm2, %v2504_v10, 0.0  ;;  %v2505_v12 = vadd.f32 %v2501_v8, %v2340_v45 }
 0xc48   : > { %2509 = vadd.xlane.f32.xlu1 %v2508_v11 }
 0xc49   : > { %v2511_v13 = vsel %vm815_vm2, %v2505_v12, 0.0 }
 0xc4a   : > { %2512 = vadd.xlane.f32.xlu0 %v2511_v13 }
 0xcd5   : > { %v2510_v14 = vpop.xlane.xlu1 %2509 }
 0xcd6   : > { %v2514_v15 = vmul.f32 0.03125, %v2510_v14 }
 0xcd7   : > { %v2513_v16 = vpop.xlane.xlu0 %2512 }
 0xcd8   : > { %v2516_v17 = vsub.f32 %v2504_v10, %v2514_v15  ;;  %v2515_v18 = vmul.f32 0.03125, %v2513_v16 }
 0xcda   : > { %v2517_v19 = vsub.f32 %v2505_v12, %v2515_v18  ;;  %v2518_v20 = vmul.f32 %v2516_v17, %v2516_v17 }
 0xcdc   : > { %v2520_v21 = vsel %vm815_vm2, %v2518_v20, 0.0  ;;  %v2519_v41 = vmul.f32 %v2517_v19, %v2517_v19 }
 0xcdd   : > { %2521 = vadd.xlane.f32.xlu1 %v2520_v21 }
 0xcde   : > { %v2523_v22 = vsel %vm815_vm2, %v2519_v41, 0.0 }
 0xcdf   : > { %2524 = vadd.xlane.f32.xlu0 %v2523_v22 }
 0xd6a   : > { %v2522_v33 = vpop.xlane.xlu1 %2521 }
 0xd6b   : > { %v2526_v23 = vmul.f32 0.03125, %v2522_v33 }
 0xd6c   : > { %v2525_v34 = vpop.xlane.xlu0 %2524 }
 0xd6d   : > { %v2528_v24 = vadd.f32 1e-12, %v2526_v23  ;;  %v2527_v25 = vmul.f32 0.03125, %v2525_v34 }
 0xd6f   : > { %3120 = vrsqrt.f32 %v2528_v24  ;;  %v2529_v26 = vadd.f32 1e-12, %v2527_v25 }
 0xd71   : > { %3122 = vrsqrt.f32 %v2529_v26 }
 0xd79   : > { %v3121_v27 = vpop.eup %3120 }
 0xd7a   : > { %v2532_v29 = vmul.f32 %v3121_v27, %v2516_v17 }
 0xd7b   : > { %v3123_v30 = vpop.eup %3122 }
 0xd7c   : > { %v2540_v35 = vmul.f32 %v2845_v28, %v2532_v29  ;;  %v2533_v36 = vmul.f32 %v3123_v30, %v2517_v19  ;;  %2555 = sbr.rel (%p2847_p5) target bundleno = 3678 (0xe5e), region = 100 }
 0xd7e   : > { %v2548_v37 = vadd.f32 %v2846_v32, %v2540_v35  ;;  %v2541_v39 = vmul.f32 %v2845_v28, %v2533_v36 }
 0xd80   : > { %2550 = vst.msk [vmem:[#allocation2] sm:$0xff] %vm815_vm2, %v2548_v37  ;;  %v2549_v40 = vadd.f32 %v2846_v32, %v2541_v39 }
 0xd82   : > { %2551 = vst.msk [vmem:[#allocation2 + $0x8] sm:$0xff] %vm815_vm2, %v2549_v40  ;;  %v2557_v45 = vrot.slane (!%p2847_p5), %v2549_v40, 7 }
 0xd84   : > { %v2560_v46 = vsel %vm2559_vm9, %v2548_v37, %v2557_v45 }
 0xd85   : > { %v2561_v47 = vpack.c.bf16 %v2560_v46, %v2560_v46 }
 0xd87   : > { %3030 = vmatmul.mubr.msk.bf16.vlgmr.msra.gmra.mrb[0].mxu0 %vm815_vm2, %v2561_v47 }
 0xe5a   : > { %v2622_v49 = vpop.f32.mrb[0].mxu0 }
 0xe5b   : > { %v2623_v50 = vadd.f32 %v2848_v48, %v2622_v49  ;;  %v3031_v51 = vpop.f32.mrb[1].mxu0 }
 0xe5c   : > { %v2625_v52 = vpop.f32.mrb[2].mxu0 }
 0xe5d   : > { %2629 = vst.msk [vmem:[#allocation4] sm:$0x3] %vm2628_vm10, %v2623_v50  ;;  %v3032_v53 = vpop.f32.mrb[3].mxu0 }
 0xe5e PF: > { %p3037_p6 = scmp.eq.s32.totalorder %s3284_s28, 1  ;;  %s3182_s19 = smov [#allocation4]  }
 0xe5f   : > { %s2637_s30 = sshll.u32 %s3182_s19, 4  ;;  %s2638_s30 = int_to_ptr.vmem [resolvable:$true] %s2637_s30 }
 0xe60   : > { %s3126_s22 = scalar_lea.vmem %s2638_s30, 32  ;;  %p3133_p10 = scmp.lt.s32.totalorder %s2638_s30, %s2638_s30 }
 0xe61   : > { %p3127_p7 = scmp.ne.s32.totalorder %s2638_s30, %s3126_s22  ;;  %p3134_p11 = scmp.lt.s32.totalorder %s3126_s22, %s3126_s22 }
 0xe63   : > { %p3128_p8 = pnand %p3127_p7, %p3037_p6  ;;  %p3135_p12 = por %p3134_p11, %p3133_p10 }
 0xe65   : > { %p3129_p9 = pneg %p3128_p8 }
 0xe67   : > { %p3136_p13 = pnand %p3135_p12, %p3129_p9 }
 0xe69   : > { %3139 = shalt.err (!%p3136_p13)
}
 0xe6a   : > { %s3686_s0 = sld [smem:[#allocation16_spill]] }
 0xe70   : > { %s3140_s2 = scalar_lea.hbm %s3686_s0, 32 }
 0xe71   : > { %p3141_p0 = scmp.ne.s32.totalorder %s3686_s0, %s3140_s2  ;;  %p3146_p3 = scmp.lt.u32.totalorder %s3140_s2, %s3686_s0 }
 0xe73   : > { %p3142_p1 = pnand %p3141_p0, %p3037_p6 }
 0xe75   : > { %p3143_p2 = pneg %p3142_p1 }
 0xe77   : > { %p3148_p4 = pnand %p3146_p3, %p3143_p2 }
 0xe79   : > { %3151 = shalt.err (!%p3148_p4)
}
 0xe7a   : > { %3034 = dma.vmem_to_hbm [thread:$0]  (%p3037_p6), %s2638_s30, 32, %s3686_s0, [#allocation5]  }
 0xe7b   : > { %3157 = dma.done.wait (%p3037_p6), [#allocation5], 32  }
 0xe7c   : > { %3159 = vsyncadd (%p3037_p6), [#allocation5], 4294967264 }
 0xe7d PF: > { %s3687_s4 = sld [smem:[#allocation7_spill]] }
 0xe83   : > { %s29_s27 = sadd.s32 1, %s3687_s4  }
 0xe84   : > { %p26_p5 = scmp.ge.s32.totalorder %s29_s27, 4  }
 0xe86   :  { %28 = sbr.rel (!%p26_p5) target bundleno = 10 (0xa), region = 160 }
 0xe8d   :  { %2650 = vsyncpa [#allocation5], 1 }
 0xe8e   :  { %2652 = vsyncpa [#allocation5 + $0x1], 1 }

</bundles_post_ra>
